<compile_context>
chip_gen: v5e
topology: v5e:2x2
jax: 0.10.0
libtpu: 0.0.40
codegen_flags: <defaults>
</compile_context>

<pallas_src>
import functools

import jax
import jax.numpy as jnp
from jax.experimental import pallas as pl
from jax.experimental.pallas import tpu as pltpu


def _wsconv2d_kernel(x_ref, w_ref, b_ref, o_ref, *, kernel_size, row_tile,
                     row_axis, use_im2col):
    """One grid step = (batch b) x (Cout tile n) x (row chunk r).

    x_ref : (1, Hp, Wp, Cin)    padded NHWC input (bf16, full image, resident)
    w_ref : (K*K*Cin, TN)       scale-folded, flattened HWIO weights (bf16)
    b_ref : (1, TN)             bias (f32)
    o_ref : (1, TH, Wo, TN)     NHWC output row-chunk tile
    """
    K = kernel_size
    TH = row_tile
    _, _, Wo, TN = o_ref.shape
    Cin = x_ref.shape[-1]

    # Row offset of this chunk inside the (resident) padded image.
    r0 = pl.multiple_of(pl.program_id(row_axis) * TH, TH)
    slab = x_ref[0, pl.ds(r0, TH + K - 1), :, :]          # (TH+K-1, Wp, Cin)

    if use_im2col:
        # Fold all K*K taps into the MXU contraction dim (kh-major, kw, cin),
        # matching reshape(HWIO weights, (K*K*Cin, Cout)).
        shifted = [slab[:, kw:kw + Wo, :] for kw in range(K)]
        patch = jnp.concatenate(
            [shifted[kw][kh:kh + TH] for kh in range(K) for kw in range(K)],
            axis=-1)                                       # (TH, Wo, K*K*Cin)
        acc = jnp.dot(patch.reshape(TH * Wo, K * K * Cin), w_ref[...],
                      preferred_element_type=jnp.float32)  # single MXU matmul
    else:
        # Small-Cin path: per-tap K=Cin matmuls, accumulated in f32.  Avoids
        # the lane-axis concat of 9 slices that are only Cin lanes wide.
        acc = jnp.zeros((TH * Wo, TN), jnp.float32)
        for t in range(K * K):
            kh, kw = divmod(t, K)
            tap = slab[kh:kh + TH, kw:kw + Wo, :].reshape(TH * Wo, Cin)
            acc = acc + jnp.dot(tap, w_ref[t * Cin:(t + 1) * Cin, :],
                                preferred_element_type=jnp.float32)

    out = (acc + b_ref[...]).astype(o_ref.dtype)
    o_ref[...] = out.reshape(1, TH, Wo, TN)


def _round_up(a, b):
    return -(-a // b) * b


def wsconv2d(x_nchw, weight_oihw, bias, *, kernel_size=3, stride=1,
             padding=1, gain=2, cout_tile=None):
    """Equalized-learning-rate Conv2d forward (stride=1 only)."""
    if stride != 1:
        # TODO(synk): strided variant (the module default is stride=1).
        raise NotImplementedError("wsconv2d Pallas kernel only supports stride=1")

    B, Cin, H, W = x_nchw.shape
    Cout, Cin_w, K, K2 = weight_oihw.shape
    assert Cin == Cin_w and K == K2 == kernel_size

    out_dtype = x_nchw.dtype
    scale = (gain / (Cin * K * K)) ** 0.5

    # ---------------- tile / grid geometry --------------------------------
    Ho = H + 2 * padding - K + 1
    Wo = W + 2 * padding - K + 1
    Wo_p = _round_up(Wo, 8)                     # sublane-aligned output width

    # Cout tile: 256 fills the 256-wide MXU on v6e/v7x; v5e's MXU is 128 wide.
    if cout_tile is None:
        try:
            kind = jax.devices()[0].device_kind.lower()
        except Exception:
            kind = ""
        is_v5e = ("v5e" in kind) or ("v5 lite" in kind) or ("v5litepod" in kind)
        cout_tile = 256 if (Cout >= 256 and not is_v5e) else 128
    TN = cout_tile
    Cout_p = _round_up(Cout, TN)
    NT = Cout_p // TN

    # Row chunk: keep the (TH*Wo_p, TN) f32 accumulator ~128 KiB.
    target_m = max(1, 32768 // TN)
    TH = min(Ho, max(1, target_m // Wo_p))
    if TH >= 8:
        TH = (TH // 8) * 8                      # aligned row-chunk stores
    Ho_p = _round_up(Ho, TH)                    # no ragged final chunk
    R = Ho_p // TH

    extra_h = Ho_p - Ho
    extra_w = Wo_p - Wo
    Hp = H + 2 * padding + extra_h
    Wp = W + 2 * padding + extra_w

    use_im2col = Cin >= 64

    # ---------------- glue (plain JAX, one fused pass per operand) --------
    # Fold the equalized-LR scale into the weights (identical result).
    w_hwio = jnp.transpose(weight_oihw, (2, 3, 1, 0)).astype(jnp.float32) * scale
    w2d = jnp.pad(w_hwio.reshape(K * K * Cin, Cout),
                  ((0, 0), (0, Cout_p - Cout))).astype(jnp.bfloat16)
    bias_p = jnp.pad(bias.astype(jnp.float32),
                     (0, Cout_p - Cout)).reshape(1, Cout_p)
    # NCHW -> NHWC + bf16 + spatial zero-pad in a single expression (lets XLA
    # fuse it into one HBM pass).  Extra right/bottom zeros only feed output
    # rows/cols that get sliced off, so valid outputs are unaffected.
    x_pad = jnp.pad(
        jnp.transpose(x_nchw, (0, 2, 3, 1)).astype(jnp.bfloat16),
        ((0, 0), (padding, padding + extra_h),
         (padding, padding + extra_w), (0, 0)))

    # ---------------- grid-axis order by operand size ---------------------
    # Whichever of {padded image, full weight matrix} is larger stays resident
    # across the other axis; the smaller one is the re-fetched block.
    img_bytes = Hp * Wp * Cin * 2
    w_bytes = K * K * Cin * Cout_p * 2
    if img_bytes >= w_bytes:
        grid = (B, NT, R)                       # image resident across n
        ix = lambda b, n, r: (b, 0, 0, 0)
        iw = lambda b, n, r: (0, n)
        ib = lambda b, n, r: (0, n)
        io = lambda b, n, r: (b, r, 0, n)
    else:
        grid = (NT, B, R)                       # weight tile resident across b
        ix = lambda n, b, r: (b, 0, 0, 0)
        iw = lambda n, b, r: (0, n)
        ib = lambda n, b, r: (0, n)
        io = lambda n, b, r: (b, r, 0, n)
    row_axis = 2                                # R is innermost in both orders

    # ---------------- VMEM budget (clamped to physical) -------------------
    out_itemsize = jnp.dtype(out_dtype).itemsize
    in_blk = Hp * Wp * Cin * 2                  # bf16 image block
    w_blk = K * K * Cin * TN * 2                # bf16 weight tile
    b_blk = TN * 4                              # f32 bias tile
    out_blk = TH * Wo_p * TN * out_itemsize     # output row-chunk tile
    interm = (TH + K - 1) * Wp * Cin * 2 + TH * Wo_p * TN * 4   # slab + f32 acc
    if use_im2col:
        interm += K * (TH + K - 1) * Wo_p * Cin * 2             # shifted slabs
        interm += TH * Wo_p * K * K * Cin * 2                   # im2col patch
    vmem_need = 2 * (in_blk + w_blk + b_blk + out_blk) + interm + (4 << 20)
    try:
        vmem_phys = int(pltpu.get_tpu_info().vmem_capacity_bytes)
    except Exception:
        vmem_phys = 64 << 20                    # conservative (v7x per-TC)
    vmem_limit = int(min(max(vmem_need, 16 << 20), vmem_phys))

    # TODO(synk): replace the full-image input block with a manually DMA'd
    # (TH+K-1)-row halo tile (memory_space=pl.ANY + make_async_copy) so very
    # large activations (e.g. 512^2) also fit v7x's 64 MiB VMEM.

    kernel = functools.partial(_wsconv2d_kernel, kernel_size=K, row_tile=TH,
                               row_axis=row_axis, use_im2col=use_im2col)

    out_nhwc = pl.pallas_call(
        kernel,
        out_shape=jax.ShapeDtypeStruct((B, Ho_p, Wo_p, Cout_p), out_dtype),
        grid=grid,
        in_specs=[
            pl.BlockSpec((1, Hp, Wp, Cin), ix),
            pl.BlockSpec((K * K * Cin, TN), iw),
            pl.BlockSpec((1, TN), ib),
        ],
        out_specs=pl.BlockSpec((1, TH, Wo_p, TN), io),
        compiler_params=pltpu.CompilerParams(
            dimension_semantics=("parallel", "parallel", "parallel"),
            vmem_limit_bytes=vmem_limit,
        ),
    )(x_pad, w2d, bias_p)

    out = out_nhwc[:, :Ho, :Wo, :Cout]          # drop alignment padding
    return jnp.transpose(out, (0, 3, 1, 2))     # back to NCHW


def _reference(x, weight, bias, *, gain=2):
    Cout, Cin, K, _ = weight.shape
    scale = (gain / (Cin * K * K)) ** 0.5
    y = jax.lax.conv_general_dilated(
        x * scale, weight, window_strides=(1, 1), padding=((1, 1), (1, 1)),
        dimension_numbers=("NCHW", "OIHW", "NCHW"))
    return y + bias.reshape(1, Cout, 1, 1)


if __name__ == "__main__":
    key = jax.random.PRNGKey(0)
    k_x, k_w, k_x2, k_w2 = jax.random.split(key, 4)

    # --- main check: small-Cin (per-tap) path -----------------------------
    B, Cin, Cout, H, W, K = 2, 4, 8, 16, 16, 3
    x = jax.random.normal(k_x, (B, Cin, H, W), dtype=jnp.float32)
    # Module __init__: nn.init.normal_(weight), zeros_(bias)
    weight = jax.random.normal(k_w, (Cout, Cin, K, K), dtype=jnp.float32)
    bias = jnp.zeros((Cout,), dtype=jnp.float32)

    y = jax.block_until_ready(wsconv2d(x, weight, bias))
    y_ref = _reference(x, weight, bias)
    assert y.shape == (B, Cout, H, W)
    # bf16 MXU operands (f32 accumulation) -> loosened tolerance.
    assert jnp.allclose(y, y_ref, rtol=3e-2, atol=3e-2)

    # --- secondary check: im2col path (Cin >= 64) -------------------------
    B2, Cin2, Cout2, H2, W2 = 1, 64, 32, 8, 8
    x2 = jax.random.normal(k_x2, (B2, Cin2, H2, W2), dtype=jnp.float32)
    w2 = jax.random.normal(k_w2, (Cout2, Cin2, K, K), dtype=jnp.float32)
    b2 = jnp.zeros((Cout2,), dtype=jnp.float32)
    y2 = jax.block_until_ready(wsconv2d(x2, w2, b2))
    y2_ref = _reference(x2, w2, b2)
    assert y2.shape == (B2, Cout2, H2, W2)
    assert jnp.allclose(y2, y2_ref, rtol=5e-2, atol=5e-2)

    print("KERNEL_OK")
</pallas_src>

<mosaic_0001>
module attributes {stable_mosaic.version = 11 : i64} {
  func.func @_wsconv2d_kernel(%arg0: i32, %arg1: i32, %arg2: i32, %arg3: memref<1x18x18x4xbf16, #tpu.memory_space<vmem>>, %arg4: memref<36x128xbf16, #tpu.memory_space<vmem>>, %arg5: memref<1x128xf32, #tpu.memory_space<vmem>>, %arg6: memref<1x16x16x128xf32, #tpu.memory_space<vmem>>) attributes {dimension_semantics = [#tpu.dimension_semantics<parallel>, #tpu.dimension_semantics<parallel>, #tpu.dimension_semantics<parallel>], iteration_bounds = array<i64: 1, 2, 1>, scalar_prefetch = 0 : i64, scratch_operands = 0 : i64, tpu.core_type = #tpu.core_type<tc>, window_params = [{transform_indices = @transform_0, window_bounds = array<i64: 1, 18, 18, 4>}, {transform_indices = @transform_1, window_bounds = array<i64: 36, 128>}, {transform_indices = @transform_2, window_bounds = array<i64: 1, 128>}, {transform_indices = @transform_3, window_bounds = array<i64: 1, 16, 16, 128>}]} {
    %c16_i32 = arith.constant 16 : i32
    %0 = arith.muli %arg2, %c16_i32 : i32
    %1 = tpu.assume_multiple %0, 16 : i32
    %c0 = arith.constant 0 : index
    %2 = arith.index_cast %1 : i32 to index
    %c0_0 = arith.constant 0 : index
    %c0_1 = arith.constant 0 : index
    %3 = vector.load %arg3[%c0, %2, %c0_0, %c0_1] : memref<1x18x18x4xbf16, #tpu.memory_space<vmem>>, vector<1x18x18x4xbf16>
    %4 = vector.shape_cast %3 : vector<1x18x18x4xbf16> to vector<18x18x4xbf16>
    %cst = arith.constant 0.000000e+00 : f32
    %5 = vector.broadcast %cst : f32 to vector<256x128xf32>
    %6 = vector.extract_strided_slice %4 {offsets = [0, 0, 0], sizes = [16, 16, 4], strides = [1, 1, 1]} : vector<18x18x4xbf16> to vector<16x16x4xbf16>
    %7 = vector.shape_cast %6 : vector<16x16x4xbf16> to vector<256x4xbf16>
    %c0_2 = arith.constant 0 : index
    %c0_3 = arith.constant 0 : index
    %8 = vector.load %arg4[%c0_2, %c0_3] : memref<36x128xbf16, #tpu.memory_space<vmem>>, vector<4x128xbf16>
    %cst_4 = arith.constant dense<0.000000e+00> : vector<256x128xf32>
    %9 = tpu.matmul %7, %8, %cst_4 {dimension_numbers = #tpu.dot_dimension_numbers<[1], [0], [0], [1], [0, 0, 1, 1], [], []>} : vector<256x4xbf16>, vector<4x128xbf16>, vector<256x128xf32> -> vector<256x128xf32>
    %10 = arith.addf %5, %9 : vector<256x128xf32>
    %11 = vector.extract_strided_slice %4 {offsets = [0, 1, 0], sizes = [16, 16, 4], strides = [1, 1, 1]} : vector<18x18x4xbf16> to vector<16x16x4xbf16>
    %12 = vector.shape_cast %11 : vector<16x16x4xbf16> to vector<256x4xbf16>
    %c4 = arith.constant 4 : index
    %c0_5 = arith.constant 0 : index
    %13 = vector.load %arg4[%c4, %c0_5] : memref<36x128xbf16, #tpu.memory_space<vmem>>, vector<4x128xbf16>
    %cst_6 = arith.constant dense<0.000000e+00> : vector<256x128xf32>
    %14 = tpu.matmul %12, %13, %cst_6 {dimension_numbers = #tpu.dot_dimension_numbers<[1], [0], [0], [1], [0, 0, 1, 1], [], []>} : vector<256x4xbf16>, vector<4x128xbf16>, vector<256x128xf32> -> vector<256x128xf32>
    %15 = arith.addf %10, %14 : vector<256x128xf32>
    %16 = vector.extract_strided_slice %4 {offsets = [0, 2, 0], sizes = [16, 16, 4], strides = [1, 1, 1]} : vector<18x18x4xbf16> to vector<16x16x4xbf16>
    %17 = vector.shape_cast %16 : vector<16x16x4xbf16> to vector<256x4xbf16>
    %c8 = arith.constant 8 : index
    %c0_7 = arith.constant 0 : index
    %18 = vector.load %arg4[%c8, %c0_7] : memref<36x128xbf16, #tpu.memory_space<vmem>>, vector<4x128xbf16>
    %cst_8 = arith.constant dense<0.000000e+00> : vector<256x128xf32>
    %19 = tpu.matmul %17, %18, %cst_8 {dimension_numbers = #tpu.dot_dimension_numbers<[1], [0], [0], [1], [0, 0, 1, 1], [], []>} : vector<256x4xbf16>, vector<4x128xbf16>, vector<256x128xf32> -> vector<256x128xf32>
    %20 = arith.addf %15, %19 : vector<256x128xf32>
    %21 = vector.extract_strided_slice %4 {offsets = [1, 0, 0], sizes = [16, 16, 4], strides = [1, 1, 1]} : vector<18x18x4xbf16> to vector<16x16x4xbf16>
    %22 = vector.shape_cast %21 : vector<16x16x4xbf16> to vector<256x4xbf16>
    %c12 = arith.constant 12 : index
    %c0_9 = arith.constant 0 : index
    %23 = vector.load %arg4[%c12, %c0_9] : memref<36x128xbf16, #tpu.memory_space<vmem>>, vector<4x128xbf16>
    %cst_10 = arith.constant dense<0.000000e+00> : vector<256x128xf32>
    %24 = tpu.matmul %22, %23, %cst_10 {dimension_numbers = #tpu.dot_dimension_numbers<[1], [0], [0], [1], [0, 0, 1, 1], [], []>} : vector<256x4xbf16>, vector<4x128xbf16>, vector<256x128xf32> -> vector<256x128xf32>
    %25 = arith.addf %20, %24 : vector<256x128xf32>
    %26 = vector.extract_strided_slice %4 {offsets = [1, 1, 0], sizes = [16, 16, 4], strides = [1, 1, 1]} : vector<18x18x4xbf16> to vector<16x16x4xbf16>
    %27 = vector.shape_cast %26 : vector<16x16x4xbf16> to vector<256x4xbf16>
    %c16 = arith.constant 16 : index
    %c0_11 = arith.constant 0 : index
    %28 = vector.load %arg4[%c16, %c0_11] : memref<36x128xbf16, #tpu.memory_space<vmem>>, vector<4x128xbf16>
    %cst_12 = arith.constant dense<0.000000e+00> : vector<256x128xf32>
    %29 = tpu.matmul %27, %28, %cst_12 {dimension_numbers = #tpu.dot_dimension_numbers<[1], [0], [0], [1], [0, 0, 1, 1], [], []>} : vector<256x4xbf16>, vector<4x128xbf16>, vector<256x128xf32> -> vector<256x128xf32>
    %30 = arith.addf %25, %29 : vector<256x128xf32>
    %31 = vector.extract_strided_slice %4 {offsets = [1, 2, 0], sizes = [16, 16, 4], strides = [1, 1, 1]} : vector<18x18x4xbf16> to vector<16x16x4xbf16>
    %32 = vector.shape_cast %31 : vector<16x16x4xbf16> to vector<256x4xbf16>
    %c20 = arith.constant 20 : index
    %c0_13 = arith.constant 0 : index
    %33 = vector.load %arg4[%c20, %c0_13] : memref<36x128xbf16, #tpu.memory_space<vmem>>, vector<4x128xbf16>
    %cst_14 = arith.constant dense<0.000000e+00> : vector<256x128xf32>
    %34 = tpu.matmul %32, %33, %cst_14 {dimension_numbers = #tpu.dot_dimension_numbers<[1], [0], [0], [1], [0, 0, 1, 1], [], []>} : vector<256x4xbf16>, vector<4x128xbf16>, vector<256x128xf32> -> vector<256x128xf32>
    %35 = arith.addf %30, %34 : vector<256x128xf32>
    %36 = vector.extract_strided_slice %4 {offsets = [2, 0, 0], sizes = [16, 16, 4], strides = [1, 1, 1]} : vector<18x18x4xbf16> to vector<16x16x4xbf16>
    %37 = vector.shape_cast %36 : vector<16x16x4xbf16> to vector<256x4xbf16>
    %c24 = arith.constant 24 : index
    %c0_15 = arith.constant 0 : index
    %38 = vector.load %arg4[%c24, %c0_15] : memref<36x128xbf16, #tpu.memory_space<vmem>>, vector<4x128xbf16>
    %cst_16 = arith.constant dense<0.000000e+00> : vector<256x128xf32>
    %39 = tpu.matmul %37, %38, %cst_16 {dimension_numbers = #tpu.dot_dimension_numbers<[1], [0], [0], [1], [0, 0, 1, 1], [], []>} : vector<256x4xbf16>, vector<4x128xbf16>, vector<256x128xf32> -> vector<256x128xf32>
    %40 = arith.addf %35, %39 : vector<256x128xf32>
    %41 = vector.extract_strided_slice %4 {offsets = [2, 1, 0], sizes = [16, 16, 4], strides = [1, 1, 1]} : vector<18x18x4xbf16> to vector<16x16x4xbf16>
    %42 = vector.shape_cast %41 : vector<16x16x4xbf16> to vector<256x4xbf16>
    %c28 = arith.constant 28 : index
    %c0_17 = arith.constant 0 : index
    %43 = vector.load %arg4[%c28, %c0_17] : memref<36x128xbf16, #tpu.memory_space<vmem>>, vector<4x128xbf16>
    %cst_18 = arith.constant dense<0.000000e+00> : vector<256x128xf32>
    %44 = tpu.matmul %42, %43, %cst_18 {dimension_numbers = #tpu.dot_dimension_numbers<[1], [0], [0], [1], [0, 0, 1, 1], [], []>} : vector<256x4xbf16>, vector<4x128xbf16>, vector<256x128xf32> -> vector<256x128xf32>
    %45 = arith.addf %40, %44 : vector<256x128xf32>
    %46 = vector.extract_strided_slice %4 {offsets = [2, 2, 0], sizes = [16, 16, 4], strides = [1, 1, 1]} : vector<18x18x4xbf16> to vector<16x16x4xbf16>
    %47 = vector.shape_cast %46 : vector<16x16x4xbf16> to vector<256x4xbf16>
    %c32 = arith.constant 32 : index
    %c0_19 = arith.constant 0 : index
    %48 = vector.load %arg4[%c32, %c0_19] : memref<36x128xbf16, #tpu.memory_space<vmem>>, vector<4x128xbf16>
    %cst_20 = arith.constant dense<0.000000e+00> : vector<256x128xf32>
    %49 = tpu.matmul %47, %48, %cst_20 {dimension_numbers = #tpu.dot_dimension_numbers<[1], [0], [0], [1], [0, 0, 1, 1], [], []>} : vector<256x4xbf16>, vector<4x128xbf16>, vector<256x128xf32> -> vector<256x128xf32>
    %50 = arith.addf %45, %49 : vector<256x128xf32>
    %c0_21 = arith.constant 0 : index
    %c0_22 = arith.constant 0 : index
    %51 = vector.load %arg5[%c0_21, %c0_22] : memref<1x128xf32, #tpu.memory_space<vmem>>, vector<1x128xf32>
    %52 = vector.broadcast %51 : vector<1x128xf32> to vector<256x128xf32>
    %53 = arith.addf %50, %52 : vector<256x128xf32>
    %54 = vector.shape_cast %53 : vector<256x128xf32> to vector<1x16x16x128xf32>
    %c0_23 = arith.constant 0 : index
    %c0_24 = arith.constant 0 : index
    %c0_25 = arith.constant 0 : index
    %c0_26 = arith.constant 0 : index
    %55 = vector.load %arg6[%c0_23, %c0_24, %c0_25, %c0_26] : memref<1x16x16x128xf32, #tpu.memory_space<vmem>>, vector<1x16x16x128xf32>
    tpu.vector_store %arg6[%c0_23, %c0_24, %c0_25, %c0_26], %54 {strides = array<i32>} : memref<1x16x16x128xf32, #tpu.memory_space<vmem>>, vector<1x16x16x128xf32>,
    return
  }
  func.func @transform_0(%arg0: i32, %arg1: i32, %arg2: i32) -> (i32, i32, i32, i32) {
    %c0_i32 = arith.constant 0 : i32
    %c0_i32_0 = arith.constant 0 : i32
    %c0_i32_1 = arith.constant 0 : i32
    %c0_i32_2 = arith.constant 0 : i32
    return %arg1, %c0_i32, %c0_i32_0, %c0_i32_1 : i32, i32, i32, i32
  }
  func.func @transform_1(%arg0: i32, %arg1: i32, %arg2: i32) -> (i32, i32) {
    %c0_i32 = arith.constant 0 : i32
    %c0_i32_0 = arith.constant 0 : i32
    return %c0_i32, %arg0 : i32, i32
  }
  func.func @transform_2(%arg0: i32, %arg1: i32, %arg2: i32) -> (i32, i32) {
    %c0_i32 = arith.constant 0 : i32
    %c0_i32_0 = arith.constant 0 : i32
    return %c0_i32, %arg0 : i32, i32
  }
  func.func @transform_3(%arg0: i32, %arg1: i32, %arg2: i32) -> (i32, i32, i32, i32) {
    %c0_i32 = arith.constant 0 : i32
    %c0_i32_0 = arith.constant 0 : i32
    return %arg1, %arg2, %c0_i32, %arg0 : i32, i32, i32, i32
  }
}

</mosaic_0001>

<bundles_post_ra>
// kernel: tpu_custom_call.1
= control target key start
LH: loop header
LB: loop body
LE: loop exit
PB: predicated region body
PF: predicated region fallthrough
CT: control target
= control target key end

     0   :  { %8 = vsyncpa [#allocation3], 0  ;;  %s4152_s0 = inlined_call_operand.vmem [shape: bf16[2,18,18,4], index: 0, kind: input, shape index: {}]   ;;  %s4153_s1 = inlined_call_operand.vmem [shape: bf16[36,128], index: 1, kind: input, shape index: {}]   ;;  %s4154_s2 = inlined_call_operand.vmem [shape: f32[1,128], index: 2, kind: input, shape index: {}]   ;;  %s4155_s3 = inlined_call_operand.hbm [shape: f32[2,16,16,128], index: 3, kind: output, shape index: {}]  }
   0x1   :  { %10 = vsyncpa [#allocation3 + $0x1], 0  ;;  %s2938_s12 = smov 0   ;;  %s2940_s13 = smov 0  }
   0x2   :  { %s2942_s14 = smov 0   ;;  %s2944_s15 = smov 0  }
   0x3   :  { %s2946_s16 = smov 0   ;;  %s2948_s17 = smov 0  }
   0x4 LB: > { %s2498_s18 = sadd.s32 4294967295, %s2914_s17   ;;  %s2499_s19 = sadd.s32 4294967294, %s2914_s17   ;;  %s2914_s17 = sphi %s2948_s17, %s16_s17   ;;  %s2910_s16 = sphi %s2946_s16, %s4300_s16   ;;  %s2906_s15 = sphi %s2944_s15, %s4299_s15   ;;  %s2902_s14 = sphi %s2942_s14, %s4298_s14   ;;  %s2898_s13 = sphi %s2940_s13, %s4297_s13   ;;  %s2894_s12 = sphi %s2938_s12, %s4296_s12  }
   0x5   : > { %s31_s20 = sadd.s32 1, %s2910_s16  ;;  %s124_s21 = sadd.s32 1, %s2902_s14 }
   0x6   : > { %p33_p0 = scmp.ge.s32.totalorder %s31_s20, 2  ;;  %p134_p1 = scmp.ne.s32.totalorder %s2902_s14, %s2898_s13 }
   0x7   : > { %p135_p2 = scmp.eq.s32.totalorder %s2498_s18, 1  ;;  %p140_p3 = scmp.ne.s32.totalorder %s2898_s13, %s2894_s12 }
   0x8   : > { %s4302_s20 = smov (%p33_p0, %s31_s20), 0  ;;  %p141_p5 = scmp.eq.s32.totalorder %s2499_s19, 1 }
   0x9   : > { %p2978_p4 = por %p135_p2, %p134_p1  ;;  %s117_s23 = ssub.s32 %s2910_s16, %s4302_s20 }
   0xa   : > { %p2504_p6 = scmp.ge.s32.totalorder %s2914_s17, 1  ;;  %p122_p7 = scmp.eq.s32.totalorder %s117_s23, 0 }
   0xb   : > { %p2985_p8 = por %p141_p5, %p140_p3  ;;  %p180_p9 = scmp.lt.s32.totalorder %s2914_s17, 3 }
   0xc   : > { %s2991_s25 = scalar_select %p122_p7, %s2902_s14, %s124_s21  }
   0xd   : > { %p181_p10 = pnand %p2504_p6, %p180_p9 }
   0xf   : > { %184 = sbr.rel (%p181_p10) target bundleno = 769 (0x301), region = 32 }
  0x14   : > { %v671_v0 = vld [vmem:[%s4153_s1] sm:$0xc]  ;;  %p211_p11 = scmp.lt.s32.totalorder %s2906_s15, 1  ;;  %v1217_v3 = vld [vmem:[%s4153_s1 + $0x4] sm:$0x3]  ;;  %vm773_vm0 = vcmask 1041408  }
  0x15   : > { %v721_v1 = vunpack.c.l.b16 %v671_v0  ;;  %v283_v4 = vld [vmem:[%s4153_s1] sm:$0x3]  ;;  %v1599_v5 = vld [vmem:[%s4153_s1 + $0x8] sm:$0x3]  ;;  %vm284_vm1 = vsmask.f32 3328 }
  0x16   : > { %s212_s28 = scalar_select %p211_p11, %s2906_s15, 1  ;;  %vm285_vm2 = vsmask.f32 7440  ;;  %v1315_v7 = vsel %vm773_vm0, %v1217_v3, 0  ;;  %v1438_v8 = vld [vmem:[%s4153_s1 + $0x4] sm:$0xc] }
  0x17   : > { %v722_v2 = vpack.c.b16 %v721_v1, %v721_v1  ;;  %v995_v9 = vsel %vm773_vm0, %v283_v4, 0  ;;  %v1607_v13 = vsel %vm773_vm0, %v1599_v5, 0  ;;  %v1445_v22 = vunpack.c.l.b16 %v1438_v8  ;;  %vm3040_vm4 = vmor %vm284_vm1, %vm285_vm2  ;;  %s208_s5 = sand.u32 1, %s2898_s13   ;;  %s2764_s10 = sshll.u32 %s2906_s15, 8 }
  0x18   : > { %s2768_s6 = smul.u32 216, %s212_s28  ;;  %vm724_vm3 = vcmask 31744   ;;  %vm1102_vm5 = vcmask 1042432   ;;  %vm1103_vm6 = vcmask 1046532   ;;  %s2388_s19 = scalar_lea.hbm %s4155_s3, %s2764_s10 }
  0x19   : > { %v723_v6 = vrot.slane %v722_v2, 2  ;;  %v1446_v42 = vpack.c.b16 %v1445_v22, %v1445_v22  ;;  %vm3343_vm7 = vmor %vm1102_vm5, %vm1103_vm6  ;;  %s2391_s23 = sshll.u32 %s2388_s19, 4  ;;  %s2373_s15 = scalar_lea.sflag [#allocation3], %s208_s5  ;;  %s2392_s23 = int_to_ptr.hbm [resolvable:$true] %s2391_s23 }
  0x1a   : > { %s3010_s11 = scalar_lea.vmem %s4152_s0, %s2768_s6  ;;  %s2505_s6 = sshll.u32 %s208_s5, 8 }
  0x1b   : > { %v775_v10 = vsel %vm773_vm0, %v723_v6, 0  ;;  %v3019_v11 = vld [vmem:[%s3010_s11 + $0x30] sm:$0xf]  ;;  %v3022_v12 = vld [vmem:[%s3010_s11 + $0x34] sm:$0xf]  ;;  %v1447_v5 = vrot.slane %v1446_v42, 2 }
  0x1c   : > { %2765 = vmatpush.bf16.msra.mxu1 %v775_v10  ;;  %2766 = vmatpush.bf16.msra.mxu2 %v775_v10  ;;  %v3026_v14 = vld [vmem:[%s3010_s11 + $0x38] sm:$0x1]  ;;  %v384_v15 = vshrl.u32 %v3019_v11, 16  ;;  %v387_v16 = vshll.u32 %v3019_v11, 16  ;;  %v393_v17 = vshll.u32 %v3022_v12, 16  ;;  %v397_v18 = vshrl.u32 %v3022_v12, 16 }
  0x1d   : > { %2767 = vmatpush.bf16.msra.mxu3 %v775_v10  ;;  %784 = vmatpush.bf16.msra.mxu0 %v775_v10  ;;  %v403_v19 = vshll.u32 %v3026_v14, 16  ;;  %v253_v20 = vld [vmem:[%s3010_s11 + $0x60] sm:$0xf]  ;;  %v254_v21 = vld [vmem:[%s3010_s11 + $0x64] sm:$0xf]  ;;  %s3940_s9 = scalar_lea.vmem [#allocation2], %s2505_s6 }
  0x1e   : > { %v386_v23 = vrot.slane %v384_v15, 4  ;;  %v389_v24 = vrot.slane %v387_v16, 5  ;;  %v395_v25 = vrot.slane %v393_v17, 5  ;;  %v399_v26 = vrot.slane %v397_v18, 4  ;;  %v255_v27 = vld [vmem:[%s3010_s11 + $0x68] sm:$0x1] }
  0x1f   : > { %v405_v28 = vrot.slane %v403_v19, 5  ;;  %v480_v29 = vshrl.u32 %v253_v20, 16  ;;  %v483_v30 = vshll.u32 %v253_v20, 16  ;;  %v489_v31 = vshll.u32 %v254_v21, 16  ;;  %v265_v36 = vld [vmem:[%s3010_s11 + $0x90] sm:$0xf] }
  0x20   : > { %1324 = vmatpush.bf16.msrb.mxu2 %v1315_v7  ;;  %1004 = vmatpush.bf16.msrb.mxu1 %v995_v9  ;;  %v390_v32 = vor.u32 %v389_v24, %v386_v23  ;;  %v400_v33 = vor.u32 %v399_v26, %v395_v25  ;;  %v493_v34 = vshrl.u32 %v254_v21, 16  ;;  %v499_v35 = vshll.u32 %v255_v27, 16  ;;  %v266_v37 = vld [vmem:[%s3010_s11 + $0x94] sm:$0xf]  ;;  %v267_v54 = vld [vmem:[%s3010_s11 + $0x98] sm:$0x1] }
  0x21   : > { %1616 = vmatpush.bf16.msrb.mxu0 %v1607_v13  ;;  %v482_v39 = vrot.slane %v480_v29, 4  ;;  %v485_v40 = vrot.slane %v483_v30, 5  ;;  %v491_v41 = vrot.slane %v489_v31, 5  ;;  %v576_v48 = vshrl.u32 %v265_v36, 16  ;;  %v3050_v0 = vld [vmem:[%s3010_s11] sm:$0xf] }
  0x22   : > { %v391_v43 = vrot.slane %v390_v32, 4  ;;  %v401_v44 = vrot.slane %v400_v33, 4  ;;  %v495_v45 = vrot.slane %v493_v34, 4  ;;  %v501_v46 = vrot.slane %v499_v35, 5  ;;  %v3057_v4 = vld [vmem:[%s3010_s11 + $0x4] sm:$0xf] }
  0x23   : > { %v486_v47 = vor.u32 %v485_v40, %v482_v39  ;;  %v579_v49 = vshll.u32 %v265_v36, 16  ;;  %v585_v50 = vshll.u32 %v266_v37, 16  ;;  %v589_v55 = vshrl.u32 %v266_v37, 16  ;;  %v3062_v10 = vld [vmem:[%s3010_s11 + $0x8] sm:$0x1]  ;;  %s2389_s21 = sshll.u32 %s3940_s9, 4  ;;  %s2390_s21 = int_to_ptr.vmem [resolvable:$true] %s2389_s21 }
  0x24   : > { %v396_v51 = vsel %vm3040_vm4, %v391_v43, %v395_v25  ;;  %v406_v52 = vsel %vm3040_vm4, %v401_v44, %v405_v28  ;;  %v496_v53 = vor.u32 %v495_v45, %v491_v41  ;;  %v578_v59 = vrot.slane %v576_v48, 4  ;;  %v3074_v26 = vld [vmem:[%s3010_s11 + $0x3c] sm:$0xf]  ;;  %v3081_v31 = vld [vmem:[%s3010_s11 + $0x40] sm:$0xf]  ;;  %s2850_s26 = sshra.s32 %s2392_s23, 4  ;;  %s2851_s26 = int_to_ptr.hbm [resolvable:$true] %s2850_s26 }
  0x25   : > { %v680_v56 = vunpack.c.l.b16 %v396_v51  ;;  %v681_v57 = vunpack.c.l.b16 %v406_v52  ;;  %v487_v58 = vrot.slane %v486_v47, 4  ;;  %v581_v61 = vrot.slane %v579_v49, 5  ;;  %v3086_v35 = vld [vmem:[%s3010_s11 + $0x44] sm:$0x1]  ;;  %s2852_s27 = scalar_lea.hbm %s2851_s26, 256  ;;  %s2856_s30 = scalar_lea.hbm %s4155_s3, 512 }
  0x26   : > { %v497_v60 = vrot.slane %v496_v53, 4  ;;  %v587_v62 = vrot.slane %v585_v50, 5  ;;  %v591_v63 = vrot.slane %v589_v55, 4  ;;  %v595_v3 = vshll.u32 %v267_v54, 16  ;;  %v3100_v50 = vld [vmem:[%s3010_s11 + $0x70] sm:$0xf]  ;;  %p2853_p12 = scmp.ne.s32.totalorder %s2851_s26, %s2852_s27  ;;  %p2857_p1 = scmp.lt.s32.totalorder %s2851_s26, %s4155_s3 }
  0x27   : > { %v3052_v1 = vpack.c.b16 %v681_v57, %v680_v56  ;;  %v492_v2 = vsel %vm3040_vm4, %v487_v58, %v491_v41  ;;  %v582_v8 = vor.u32 %v581_v61, %v578_v59  ;;  %v288_v16 = vshrl.u32 %v3050_v0, 16  ;;  %v3091_v41 = vld [vmem:[%s3010_s11 + $0x6c] sm:$0xf]  ;;  %v3107_v54 = vld [vmem:[%s3010_s11 + $0x74] sm:$0x1]  ;;  %p2858_p2 = scmp.lt.s32.totalorder %s2856_s30, %s2852_s27 }
  0x28   : > { %v502_v6 = vsel %vm3040_vm4, %v497_v60, %v501_v46  ;;  %v688_v7 = vunpack.c.l.b16 %v492_v2  ;;  %v592_v9 = vor.u32 %v591_v63, %v587_v62  ;;  %v597_v15 = vrot.slane %v595_v3, 5  ;;  %p2854_p13 = pnand %p2853_p12, %p2978_p4 }
  0x29   : > { %2511 = vmatmul.msk.bf16.vlgmr.msra.gmra.mxu1 %vm724_vm3, %v3052_v1  ;;  %v689_v13 = vunpack.c.l.b16 %v502_v6  ;;  %v291_v17 = vshll.u32 %v3050_v0, 16  ;;  %v583_v18 = vrot.slane %v582_v8, 4  ;;  %v297_v20 = vshll.u32 %v3057_v4, 16  ;;  %p2859_p3 = por %p2858_p2, %p2857_p1 }
  0x2a   : > { %v593_v19 = vrot.slane %v592_v9, 4  ;;  %v301_v21 = vshrl.u32 %v3057_v4, 16  ;;  %v290_v23 = vrot.slane %v288_v16, 4  ;;  %v307_v25 = vshll.u32 %v3062_v10, 16  ;;  %p2855_p0 = pneg %p2854_p13 }
  0x2b   : > { %v3070_v22 = vpack.c.b16 %v689_v13, %v688_v7  ;;  %v293_v24 = vrot.slane %v291_v17, 5  ;;  %v588_v27 = vsel %vm3040_vm4, %v583_v18, %v587_v62  ;;  %v299_v29 = vrot.slane %v297_v20, 5  ;;  %v268_v7 = vld [vmem:[%s3010_s11 + $0x9c] sm:$0xf] }
  0x2c   : > { %v598_v28 = vsel %vm3040_vm4, %v593_v19, %v597_v15  ;;  %v303_v30 = vrot.slane %v301_v21, 4  ;;  %v696_v32 = vunpack.c.l.b16 %v588_v27  ;;  %v309_v37 = vrot.slane %v307_v25, 5  ;;  %v269_v15 = vld [vmem:[%s3010_s11 + $0xa0] sm:$0xf]  ;;  %p2860_p5 = pnand %p2859_p3, %p2855_p0 }
  0x2d   : > { %4200 = vst [vmem:[#allocation5_spill] sm:$0xff] %v3070_v22  ;;  %2515 = vmatmul.msk.bf16.vlgmr.msra.gmra.mxu2 %vm724_vm3, %v3070_v22  ;;  %v697_v33 = vunpack.c.l.b16 %v598_v28  ;;  %v294_v34 = vor.u32 %v293_v24, %v290_v23  ;;  %v1452_v39 = vsel %vm773_vm0, %v1447_v5, 0  ;;  %v408_v40 = vshrl.u32 %v3074_v26, 16  ;;  %v270_v23 = vld [vmem:[%s3010_s11 + $0xa4] sm:$0x1] }
  0x2e   : > { %v304_v36 = vor.u32 %v303_v30, %v299_v29  ;;  %1461 = vmatpush.bf16.msrb.mxu3 %v1452_v39  ;;  %v411_v44 = vshll.u32 %v3074_v26, 16  ;;  %v417_v45 = vshll.u32 %v3081_v31, 16  ;;  %v421_v48 = vshrl.u32 %v3081_v31, 16 }
  0x2f   : > { %v3093_v42 = vpack.c.b16 %v697_v33, %v696_v32  ;;  %v295_v43 = vrot.slane %v294_v34, 4  ;;  %v410_v47 = vrot.slane %v408_v40, 4  ;;  %v427_v49 = vshll.u32 %v3086_v35, 16 }
  0x30   : > { %v305_v46 = vrot.slane %v304_v36, 4  ;;  %v413_v52 = vrot.slane %v411_v44, 5  ;;  %v419_v53 = vrot.slane %v417_v45, 5  ;;  %v504_v55 = vshrl.u32 %v3091_v41, 16  ;;  %v3125_v44 = vld [vmem:[%s3010_s11 + $0xc] sm:$0xf] }
  0x31   : > { %4201 = vst [vmem:[#allocation6_spill] sm:$0xff] %v3093_v42  ;;  %2519 = vmatmul.msk.bf16.vlgmr.msra.gmra.mxu3 %vm724_vm3, %v3093_v42  ;;  %v300_v51 = vsel %vm3040_vm4, %v295_v43, %v299_v29  ;;  %v423_v58 = vrot.slane %v421_v48, 4  ;;  %v429_v59 = vrot.slane %v427_v49, 5  ;;  %v507_v63 = vshll.u32 %v3091_v41, 16  ;;  %v3132_v48 = vld [vmem:[%s3010_s11 + $0x10] sm:$0xf] }
  0x32   : > { %v310_v56 = vsel %vm3040_vm4, %v305_v46, %v309_v37  ;;  %v672_v57 = vunpack.c.l.b16 %v300_v51  ;;  %v414_v61 = vor.u32 %v413_v52, %v410_v47  ;;  %v506_v62 = vrot.slane %v504_v55, 4  ;;  %v3135_v49 = vld [vmem:[%s3010_s11 + $0x14] sm:$0x1] }
  0x33   : > { %v673_v60 = vunpack.c.l.b16 %v310_v56  ;;  %v424_v2 = vor.u32 %v423_v58, %v419_v53  ;;  %v513_v3 = vshll.u32 %v3100_v50, 16  ;;  %v517_v5 = vshrl.u32 %v3100_v50, 16 }
  0x34   : > { %v523_v6 = vshll.u32 %v3107_v54, 16  ;;  %v415_v9 = vrot.slane %v414_v61, 4  ;;  %v509_v13 = vrot.slane %v507_v63, 5  ;;  %v600_v24 = vshrl.u32 %v268_v7, 16 }
  0x35   : > { %v704_v8 = vpack.c.b16 %v673_v60, %v672_v57  ;;  %v425_v16 = vrot.slane %v424_v2, 4  ;;  %v515_v17 = vrot.slane %v513_v3, 5  ;;  %v519_v18 = vrot.slane %v517_v5, 4  ;;  %v3147_v2 = vld [vmem:[%s3010_s11 + $0x48] sm:$0xf] }
  0x36   : > { %v525_v19 = vrot.slane %v523_v6, 5  ;;  %v420_v20 = vsel %vm3040_vm4, %v415_v9, %v419_v53  ;;  %v510_v21 = vor.u32 %v509_v13, %v506_v62  ;;  %v603_v25 = vshll.u32 %v268_v7, 16 }
  0x37   : > { %2507 = vmatmul.msk.bf16.vlgmr.msra.gmra.mxu0 %vm724_vm3, %v704_v8  ;;  %v430_v27 = vsel %vm3040_vm4, %v425_v16, %v429_v59  ;;  %v682_v28 = vunpack.c.l.b16 %v420_v20  ;;  %v520_v29 = vor.u32 %v519_v18, %v515_v17  ;;  %v609_v30 = vshll.u32 %v269_v15, 16  ;;  %v3154_v8 = vld [vmem:[%s3010_s11 + $0x4c] sm:$0xf] }
  0x38   : > { %v683_v32 = vunpack.c.l.b16 %v430_v27  ;;  %v511_v33 = vrot.slane %v510_v21, 4  ;;  %v602_v34 = vrot.slane %v600_v24, 4  ;;  %v605_v36 = vrot.slane %v603_v25, 5 }
  0x39   : > { %v521_v37 = vrot.slane %v520_v29, 4  ;;  %v611_v39 = vrot.slane %v609_v30, 5  ;;  %v613_v40 = vshrl.u32 %v269_v15, 16  ;;  %v619_v43 = vshll.u32 %v270_v23, 16 }
  0x3a   : > { %v3127_v45 = vpack.c.b16 %v683_v32, %v682_v28  ;;  %v516_v46 = vsel %vm3040_vm4, %v511_v33, %v515_v17  ;;  %v606_v47 = vor.u32 %v605_v36, %v602_v34  ;;  %v312_v58 = vshrl.u32 %v3125_v44, 16  ;;  %v3168_v28 = vld [vmem:[%s3010_s11 + $0x78] sm:$0xf] }
  0x3b   : > { %v526_v51 = vsel %vm3040_vm4, %v521_v37, %v525_v19  ;;  %v690_v52 = vunpack.c.l.b16 %v516_v46  ;;  %v615_v53 = vrot.slane %v613_v40, 4  ;;  %v621_v55 = vrot.slane %v619_v43, 5  ;;  %v3159_v19 = vld [vmem:[%s3010_s11 + $0x50] sm:$0x1] }
  0x3c   : > { %2512 = vmatmul.msk.bf16.gmra.mxu1 %vm724_vm3, %v3127_v45  ;;  %v691_v56 = vunpack.c.l.b16 %v526_v51  ;;  %v607_v57 = vrot.slane %v606_v47, 4  ;;  %v315_v59 = vshll.u32 %v3125_v44, 16  ;;  %v321_v61 = vshll.u32 %v3132_v48, 16  ;;  %v3176_v47 = vld [vmem:[%s3010_s11 + $0x7c] sm:$0xf] }
  0x3d   : > { %v616_v60 = vor.u32 %v615_v53, %v611_v39  ;;  %v325_v62 = vshrl.u32 %v3132_v48, 16  ;;  %v331_v63 = vshll.u32 %v3135_v49, 16  ;;  %v314_v6 = vrot.slane %v312_v58, 4  ;;  %v3179_v51 = vld [vmem:[%s3010_s11 + $0x80] sm:$0x1] }
  0x3e   : > { %v3149_v3 = vpack.c.b16 %v691_v56, %v690_v52  ;;  %v612_v5 = vsel %vm3040_vm4, %v607_v57, %v611_v39  ;;  %v317_v7 = vrot.slane %v315_v59, 5  ;;  %v323_v15 = vrot.slane %v321_v61, 5 }
  0x3f   : > { %v617_v9 = vrot.slane %v616_v60, 4  ;;  %v698_v13 = vunpack.c.l.b16 %v612_v5  ;;  %v327_v16 = vrot.slane %v325_v62, 4  ;;  %v333_v18 = vrot.slane %v331_v63, 5 }
  0x40   : > { %2516 = vmatmul.msk.bf16.gmra.mxu2 %vm724_vm3, %v3149_v3  ;;  %v318_v17 = vor.u32 %v317_v7, %v314_v6  ;;  %v432_v20 = vshrl.u32 %v3147_v2, 16  ;;  %v435_v21 = vshll.u32 %v3147_v2, 16  ;;  %v441_v25 = vshll.u32 %v3154_v8, 16  ;;  %v3191_v7 = vld [vmem:[%s3010_s11 + $0xa8] sm:$0xf] }
  0x41   : > { %v622_v23 = vsel %vm3040_vm4, %v617_v9, %v621_v55  ;;  %v328_v24 = vor.u32 %v327_v16, %v323_v15  ;;  %v445_v27 = vshrl.u32 %v3154_v8, 16  ;;  %v451_v39 = vshll.u32 %v3159_v19, 16  ;;  %4203 = vst [vmem:[#allocation8_spill] sm:$0xff] %v3191_v7  ;;  %v3198_v16 = vld [vmem:[%s3010_s11 + $0xac] sm:$0xf] }
  0x42   : > { %v699_v29 = vunpack.c.l.b16 %v622_v23  ;;  %v319_v30 = vrot.slane %v318_v17, 4  ;;  %v434_v32 = vrot.slane %v432_v20, 4  ;;  %v437_v33 = vrot.slane %v435_v21, 5  ;;  %4204 = vst [vmem:[#allocation9_spill] sm:$0xff] %v3198_v16  ;;  %v3203_v23 = vld [vmem:[%s3010_s11 + $0xb0] sm:$0x1] }
  0x43   : > { %v329_v34 = vrot.slane %v328_v24, 4  ;;  %v443_v36 = vrot.slane %v441_v25, 5  ;;  %v447_v37 = vrot.slane %v445_v27, 4  ;;  %v528_v52 = vshrl.u32 %v3168_v28, 16  ;;  %4205 = vst [vmem:[#allocation10_spill] sm:$0xff] %v3203_v23 }
  0x44   : > { %v3171_v40 = vpack.c.b16 %v699_v29, %v698_v13  ;;  %v324_v43 = vsel %vm3040_vm4, %v319_v30, %v323_v15  ;;  %v438_v46 = vor.u32 %v437_v33, %v434_v32  ;;  %v453_v57 = vrot.slane %v451_v39, 5 }
  0x45   : > { %v334_v53 = vsel %vm3040_vm4, %v329_v34, %v333_v18  ;;  %v674_v55 = vunpack.c.l.b16 %v324_v43  ;;  %v448_v56 = vor.u32 %v447_v37, %v443_v36  ;;  %v530_v60 = vrot.slane %v528_v52, 4 }
  0x46   : > { %4202 = vst [vmem:[#allocation7_spill] sm:$0xff] %v3171_v40  ;;  %2520 = vmatmul.msk.bf16.gmra.mxu3 %vm724_vm3, %v3171_v40  ;;  %v675_v58 = vunpack.c.l.b16 %v334_v53  ;;  %v439_v59 = vrot.slane %v438_v46, 4  ;;  %v531_v61 = vshll.u32 %v3168_v28, 16  ;;  %v537_v63 = vshll.u32 %v3176_v47, 16 }
  0x47   : > { %v449_v62 = vrot.slane %v448_v56, 4  ;;  %v541_v5 = vshrl.u32 %v3176_v47, 16  ;;  %v547_v6 = vshll.u32 %v3179_v51, 16  ;;  %v624_v29 = vshrl.u32 %v3191_v7, 16 }
  0x48   : > { %v3193_v9 = vpack.c.b16 %v675_v58, %v674_v55  ;;  %v444_v13 = vsel %vm3040_vm4, %v439_v59, %v443_v36  ;;  %v533_v15 = vrot.slane %v531_v61, 5  ;;  %v539_v20 = vrot.slane %v537_v63, 5  ;;  %v3212_v36 = vld [vmem:[%s3010_s11 + $0x18] sm:$0xf] }
  0x49   : > { %v454_v17 = vsel %vm3040_vm4, %v449_v62, %v453_v57  ;;  %v684_v18 = vunpack.c.l.b16 %v444_v13  ;;  %v543_v21 = vrot.slane %v541_v5, 4  ;;  %v549_v27 = vrot.slane %v547_v6, 5  ;;  %v3218_v57 = vld [vmem:[%s3010_s11 + $0x1c] sm:$0xf]  ;;  %v3231_v13 = vld [vmem:[%s3010_s11 + $0x54] sm:$0xf] }
  0x4a   : > { %2508 = vmatmul.msk.bf16.gmra.mxu0 %vm724_vm3, %v3193_v9  ;;  %v685_v24 = vunpack.c.l.b16 %v454_v17  ;;  %v534_v25 = vor.u32 %v533_v15, %v530_v60  ;;  %v627_v32 = vshll.u32 %v3191_v7, 16  ;;  %v633_v33 = vshll.u32 %v3198_v16, 16  ;;  %v3225_v60 = vld [vmem:[%s3010_s11 + $0x20] sm:$0x1] }
  0x4b   : > { %v544_v30 = vor.u32 %v543_v21, %v539_v20  ;;  %v637_v34 = vshrl.u32 %v3198_v16, 16  ;;  %v626_v43 = vrot.slane %v624_v29, 4  ;;  %v643_v46 = vshll.u32 %v3203_v23, 16  ;;  %v3311_v16 = vld [vmem:[%s3010_s11 + $0x2c] sm:$0x1] }
  0x4c   : > { %v3214_v37 = vpack.c.b16 %v685_v24, %v684_v18  ;;  %v535_v39 = vrot.slane %v534_v25, 4  ;;  %v629_v53 = vrot.slane %v627_v32, 5  ;;  %v635_v55 = vrot.slane %v633_v33, 5  ;;  %v3240_v33 = vld [vmem:[%s3010_s11 + $0x58] sm:$0xf] }
  0x4d   : > { %v545_v52 = vrot.slane %v544_v30, 4  ;;  %v639_v56 = vrot.slane %v637_v34, 4  ;;  %v645_v59 = vrot.slane %v643_v46, 5  ;;  %v336_v61 = vshrl.u32 %v3212_v36, 16 }
  0x4e   : > { %4206 = vst [vmem:[#allocation11_spill] sm:$0xff] %v3214_v37  ;;  %2513 = vmatmul.msk.bf16.gmra.mxu1 %vm724_vm3, %v3214_v37  ;;  %v540_v58 = vsel %vm3040_vm4, %v535_v39, %v539_v20  ;;  %v630_v5 = vor.u32 %v629_v53, %v626_v43  ;;  %v339_v18 = vshll.u32 %v3212_v36, 16  ;;  %v345_v20 = vshll.u32 %v3218_v57, 16  ;;  %v3248_v53 = vld [vmem:[%s3010_s11 + $0x5c] sm:$0x1] }
  0x4f   : > { %v550_v62 = vsel %vm3040_vm4, %v545_v52, %v549_v27  ;;  %v692_v63 = vunpack.c.l.b16 %v540_v58  ;;  %v640_v6 = vor.u32 %v639_v56, %v635_v55  ;;  %v338_v17 = vrot.slane %v336_v61, 4  ;;  %v3251_v56 = vld [vmem:[%s3010_s11 + $0x84] sm:$0xf] }
  0x50   : > { %v693_v15 = vunpack.c.l.b16 %v550_v62  ;;  %v631_v21 = vrot.slane %v630_v5, 4  ;;  %v349_v25 = vshrl.u32 %v3218_v57, 16  ;;  %v355_v27 = vshll.u32 %v3225_v60, 16  ;;  %4207 = vst [vmem:[#allocation12_spill] sm:$0xff] %v3251_v56 }
  0x51   : > { %v641_v24 = vrot.slane %v640_v6, 4  ;;  %v341_v30 = vrot.slane %v339_v18, 5  ;;  %v347_v32 = vrot.slane %v345_v20, 5  ;;  %v456_v34 = vshrl.u32 %v3231_v13, 16 }
  0x52   : > { %v3237_v29 = vpack.c.b16 %v693_v15, %v692_v63  ;;  %v636_v39 = vsel %vm3040_vm4, %v631_v21, %v635_v55  ;;  %v351_v46 = vrot.slane %v349_v25, 4  ;;  %v357_v52 = vrot.slane %v355_v27, 5 }
  0x53   : > { %v646_v43 = vsel %vm3040_vm4, %v641_v24, %v645_v59  ;;  %v700_v58 = vunpack.c.l.b16 %v636_v39  ;;  %v342_v62 = vor.u32 %v341_v30, %v338_v17  ;;  %v458_v63 = vrot.slane %v456_v34, 4  ;;  %v3263_v30 = vld [vmem:[%s3010_s11 + $0x88] sm:$0xf] }
  0x54   : > { %2517 = vmatmul.msk.bf16.gmra.mxu2 %vm724_vm3, %v3237_v29  ;;  %v701_v61 = vunpack.c.l.b16 %v646_v43  ;;  %v352_v5 = vor.u32 %v351_v46, %v347_v32  ;;  %v459_v55 = vshll.u32 %v3231_v13, 16  ;;  %v465_v59 = vshll.u32 %v3240_v33, 16  ;;  %v3270_v43 = vld [vmem:[%s3010_s11 + $0x8c] sm:$0x1] }
  0x55   : > { %v469_v6 = vshrl.u32 %v3240_v33, 16  ;;  %v343_v18 = vrot.slane %v342_v62, 4  ;;  %v475_v20 = vshll.u32 %v3248_v53, 16  ;;  %v552_v21 = vshrl.u32 %v3251_v56, 16 }
  0x56   : > { %v3258_v15 = vpack.c.b16 %v701_v61, %v700_v58  ;;  %v353_v24 = vrot.slane %v352_v5, 4  ;;  %v461_v25 = vrot.slane %v459_v55, 5  ;;  %v467_v27 = vrot.slane %v465_v59, 5 }
  0x57   : > { %v471_v17 = vrot.slane %v469_v6, 4  ;;  %v348_v34 = vsel %vm3040_vm4, %v343_v18, %v347_v32  ;;  %v477_v39 = vrot.slane %v475_v20, 5  ;;  %v554_v46 = vrot.slane %v552_v21, 4  ;;  %v3278_v18 = vld [vmem:[%s3010_s11 + $0xb4] sm:$0xf] }
  0x58   : > { %4208 = vst [vmem:[#allocation13_spill] sm:$0xff] %v3258_v15  ;;  %2521 = vmatmul.msk.bf16.gmra.mxu3 %vm724_vm3, %v3258_v15  ;;  %v555_v58 = vshll.u32 %v3251_v56, 16  ;;  %v358_v61 = vsel %vm3040_vm4, %v353_v24, %v357_v52  ;;  %v676_v62 = vunpack.c.l.b16 %v348_v34  ;;  %v462_v5 = vor.u32 %v461_v25, %v458_v63  ;;  %v3284_v63 = vld [vmem:[%s3010_s11 + $0xb8] sm:$0xf] }
  0x59   : > { %v472_v55 = vor.u32 %v471_v17, %v467_v27  ;;  %v677_v59 = vunpack.c.l.b16 %v358_v61  ;;  %v561_v15 = vshll.u32 %v3263_v30, 16  ;;  %v565_v32 = vshrl.u32 %v3263_v30, 16  ;;  %4209 = vst [vmem:[#allocation14_spill] sm:$0xff] %v3278_v18  ;;  %v3291_v61 = vld [vmem:[%s3010_s11 + $0xbc] sm:$0x1] }
  0x5a   : > { %v557_v6 = vrot.slane %v555_v58, 5  ;;  %v463_v20 = vrot.slane %v462_v5, 4  ;;  %v571_v7 = vshll.u32 %v3270_v43, 16  ;;  %4210 = vst [vmem:[#allocation15_spill] sm:$0xff] %v3284_v63  ;;  %v648_v5 = vshrl.u32 %v3278_v18, 16 }
  0x5b   : > { %v473_v21 = vrot.slane %v472_v55, 4  ;;  %v3281_v23 = vpack.c.b16 %v677_v59, %v676_v62  ;;  %v563_v24 = vrot.slane %v561_v15, 5  ;;  %v567_v34 = vrot.slane %v565_v32, 4  ;;  %4211 = vst [vmem:[#allocation16_spill] sm:$0xff] %v3291_v61 }
  0x5c   : > { %v558_v52 = vor.u32 %v557_v6, %v554_v46  ;;  %v468_v25 = vsel %vm3040_vm4, %v463_v20, %v467_v27  ;;  %v573_v58 = vrot.slane %v571_v7, 5  ;;  %v650_v59 = vrot.slane %v648_v5, 4 }
  0x5d   : > { %v478_v17 = vsel %vm3040_vm4, %v473_v21, %v477_v39  ;;  %2509 = vmatmul.msk.bf16.gmra.mxu0 %vm724_vm3, %v3281_v23  ;;  %v686_v15 = vunpack.c.l.b16 %v468_v25  ;;  %v568_v55 = vor.u32 %v567_v34, %v563_v24  ;;  %v651_v27 = vshll.u32 %v3278_v18, 16  ;;  %v3300_v39 = vld [vmem:[%s3010_s11 + $0x24] sm:$0xf] }
  0x5e   : > { %v687_v46 = vunpack.c.l.b16 %v478_v17  ;;  %v559_v62 = vrot.slane %v558_v52, 4  ;;  %v657_v6 = vshll.u32 %v3284_v63, 16  ;;  %v661_v7 = vshrl.u32 %v3284_v63, 16  ;;  %v3308_v52 = vld [vmem:[%s3010_s11 + $0x28] sm:$0xf] }
  0x5f   : > { %v569_v21 = vrot.slane %v568_v55, 4  ;;  %v667_v25 = vshll.u32 %v3291_v61, 16  ;;  %v653_v17 = vrot.slane %v651_v27, 5  ;;  %v1110_v63 = vrot.slane %v3062_v10, 5 }
  0x60   : > { %v3302_v32 = vpack.c.b16 %v687_v46, %v686_v15  ;;  %v564_v20 = vsel %vm3040_vm4, %v559_v62, %v563_v24  ;;  %v659_v5 = vrot.slane %v657_v6, 5  ;;  %v663_v18 = vrot.slane %v661_v7, 4 }
  0x61   : > { %v694_v34 = vunpack.c.l.b16 %v564_v20  ;;  %v574_v15 = vsel %vm3040_vm4, %v569_v21, %v573_v58  ;;  %v669_v24 = vrot.slane %v667_v25, 5  ;;  %v360_v46 = vshrl.u32 %v3300_v39, 16  ;;  %v1873_v21 = vld [vmem:[%s4153_s1 + $0xc] sm:$0x3] }
  0x62   : > { %4212 = vst [vmem:[#allocation17_spill] sm:$0xff] %v3302_v32  ;;  %2514 = vmatmul.msk.bf16.gmra.mxu1 %vm724_vm3, %v3302_v32  ;;  %v695_v62 = vunpack.c.l.b16 %v574_v15  ;;  %v654_v55 = vor.u32 %v653_v17, %v650_v59  ;;  %v664_v61 = vor.u32 %v663_v18, %v659_v5  ;;  %v363_v27 = vshll.u32 %v3300_v39, 16  ;;  %v2030_v17 = vld [vmem:[%s4153_s1 + $0xc] sm:$0xc] }
  0x63   : > { %v362_v6 = vrot.slane %v360_v46, 4  ;;  %v369_v7 = vshll.u32 %v3308_v52, 16  ;;  %v373_v20 = vshrl.u32 %v3308_v52, 16  ;;  %v379_v10 = vshll.u32 %v3311_v16, 16  ;;  %v1738_v46 = vld [vmem:[%s4153_s1 + $0x8] sm:$0xc] }
  0x64   : > { %v3323_v40 = vpack.c.b16 %v695_v62, %v694_v34  ;;  %v655_v42 = vrot.slane %v654_v55, 4  ;;  %v665_v56 = vrot.slane %v664_v61, 4  ;;  %v365_v58 = vrot.slane %v363_v27, 5  ;;  %v2173_v62 = vld [vmem:[%s4153_s1 + $0x10] sm:$0x3] }
  0x65   : > { %v371_v59 = vrot.slane %v369_v7, 5  ;;  %v375_v18 = vrot.slane %v373_v20, 4  ;;  %v381_v25 = vrot.slane %v379_v10, 5 }
  0x66   : > { %4213 = vst [vmem:[#allocation18_spill] sm:$0xff] %v3323_v40  ;;  %2518 = vmatmul.msk.bf16.gmra.mxu2 %vm724_vm3, %v3323_v40  ;;  %v660_v34 = vsel %vm3040_vm4, %v655_v42, %v659_v5  ;;  %v670_v61 = vsel %vm3040_vm4, %v665_v56, %v669_v24  ;;  %v366_v15 = vor.u32 %v365_v58, %v362_v6  ;;  %v2603_v42 = vrot.slane %v3050_v0, 9 }
  0x67   : > { %v702_v55 = vunpack.c.l.b16 %v660_v34  ;;  %v703_v27 = vunpack.c.l.b16 %v670_v61  ;;  %v376_v7 = vor.u32 %v375_v18, %v371_v59  ;;  %v1107_v5 = vrot.slane %v3057_v4, 5 }
  0x68   : > { %v367_v56 = vrot.slane %v366_v15, 4  ;;  %v1883_v24 = vsel %vm773_vm0, %v1873_v21, 0  ;;  %v2035_v6 = vunpack.c.l.b16 %v2030_v17  ;;  %v1743_v40 = vunpack.c.l.b16 %v1738_v46 }
  0x69   : > { %v3350_v10 = vpack.c.b16 %v703_v27, %v702_v55  ;;  %v377_v58 = vrot.slane %v376_v7, 4  ;;  %1892 = vmatpush.bf16.msra.mxu2 %v1883_v24  ;;  %v2181_v18 = vsel %vm773_vm0, %v2173_v62, 0  ;;  %v1108_v0 = vsel %vm3343_vm7, %v2603_v42, %v1107_v5  ;;  %v2746_v7 = vld [vmem:[%s3010_s11] sm:$0xff] }
  0x6a   : > { %v372_v34 = vsel %vm3040_vm4, %v367_v56, %v371_v59  ;;  %v1109_v61 = vrot.slane %v1107_v5, 4  ;;  %v2036_v15 = vpack.c.b16 %v2035_v6, %v2035_v6  ;;  %2190 = vmatpush.bf16.msra.mxu0 %v2181_v18  ;;  %v1218_v17 = vunpack.c.l.b16 %v1108_v0  ;;  %v2747_v0 = vld [vmem:[%s3010_s11 + $0xc] sm:$0xff] }
  0x6b   : > { %2522 = vmatmul.msk.bf16.gmra.mxu3 %vm724_vm3, %v3350_v10  ;;  %v382_v4 = vsel %vm3040_vm4, %v377_v58, %v381_v25  ;;  %v678_v21 = vunpack.c.l.b16 %v372_v34  ;;  %v1744_v46 = vpack.c.b16 %v1743_v40, %v1743_v40  ;;  %v2604_v27 = vrot.slane %v3125_v44, 9 }
  0x6c   : > { %v679_v55 = vunpack.c.l.b16 %v382_v4  ;;  %v1111_v62 = vsel %vm3343_vm7, %v1109_v61, %v1110_v63  ;;  %v2037_v59 = vrot.slane %v2036_v15, 2  ;;  %v1114_v5 = vrot.slane %v3132_v48, 5  ;;  %v3390_v15 = vld [vmem:[%s3010_s11 + $0x18] sm:$0xff] }
  0x6d   : > { %v1219_v42 = vunpack.c.l.b16 %v1111_v62  ;;  %v1745_v56 = vrot.slane %v1744_v46, 2  ;;  %v1117_v24 = vrot.slane %v3135_v49, 5  ;;  %v1121_v61 = vrot.slane %v3218_v57, 5  ;;  %v3410_v62 = vld [vmem:[%s3010_s11 + $0x24] sm:$0xff] }
  0x6e   : > { %v3367_v6 = vpack.c.b16 %v679_v55, %v678_v21  ;;  %v2042_v25 = vsel %vm773_vm0, %v2037_v59, 0  ;;  %v1115_v63 = vsel %vm3343_vm7, %v2604_v27, %v1114_v5  ;;  %v1116_v44 = vrot.slane %v1114_v5, 4 }
  0x6f   : > { %v1250_v40 = vpack.c.b16 %v1219_v42, %v1218_v17  ;;  %2051 = vmatpush.bf16.msra.mxu3 %v2042_v25  ;;  %v1750_v58 = vsel %vm773_vm0, %v1745_v56, 0  ;;  %v1220_v48 = vunpack.c.l.b16 %v1115_v63  ;;  %v2605_v4 = vrot.slane %v3212_v36, 9  ;;  %v3432_v25 = vld [vmem:[%s3010_s11 + $0x30] sm:$0xff] }
  0x70   : > { %2510 = vmatmul.msk.bf16.gmra.mxu0 %vm724_vm3, %v3367_v6  ;;  %1759 = vmatpush.bf16.msra.mxu1 %v1750_v58  ;;  %v1118_v49 = vsel %vm3343_vm7, %v1116_v44, %v1117_v24  ;;  %v1123_v21 = vrot.slane %v1121_v61, 4  ;;  %v1124_v17 = vrot.slane %v3225_v60, 5  ;;  %v1128_v60 = vrot.slane %v3308_v52, 5 }
  0x71   : > { %v1221_v18 = vunpack.c.l.b16 %v1118_v49  ;;  %v2606_v59 = vrot.slane %v3300_v39, 9  ;;  %v1138_v63 = vrot.slane %v3026_v14, 5 }
  0x72   : > { %2587 = vmatmul.msk.bf16.vlgmr.msrb.gmra.mxu1 %vm724_vm3, %v2746_v7  ;;  %v1125_v57 = vsel %vm3343_vm7, %v1123_v21, %v1124_v17  ;;  %v1130_v27 = vrot.slane %v1128_v60, 4  ;;  %v1131_v7 = vrot.slane %v3311_v16, 5  ;;  %v1135_v16 = vrot.slane %v3022_v12, 5  ;;  %v3460_v21 = vld [vmem:[%s3010_s11 + $0x3c] sm:$0xff] }
  0x73   : > { %v3378_v34 = vpack.c.b16 %v1221_v18, %v1220_v48  ;;  %v1223_v55 = vunpack.c.l.b16 %v1125_v57  ;;  %v1129_v42 = vsel %vm3343_vm7, %v2606_v59, %v1128_v60  ;;  %v2608_v17 = vrot.slane %v3074_v26, 9 }
  0x74   : > { %v1132_v52 = vsel %vm3343_vm7, %v1130_v27, %v1131_v7  ;;  %v1224_v56 = vunpack.c.l.b16 %v1129_v42  ;;  %v1137_v58 = vrot.slane %v1135_v16, 4  ;;  %v1145_v57 = vrot.slane %v3086_v35, 5 }
  0x75   : > { %v1225_v5 = vunpack.c.l.b16 %v1132_v52 }
  0x76   : > { %2619 = vmatmul.msk.bf16.vlgmr.msrb.gmra.mxu2 %vm724_vm3, %v1250_v40  ;;  %v2607_v40 = vrot.slane %v3019_v11, 9  ;;  %v1139_v12 = vsel %vm3343_vm7, %v1137_v58, %v1138_v63  ;;  %v1152_v63 = vrot.slane %v3159_v19, 5 }
  0x77   : > { %v3424_v39 = vpack.c.b16 %v1225_v5, %v1224_v56  ;;  %v1227_v49 = vunpack.c.l.b16 %v1139_v12  ;;  %v1149_v56 = vrot.slane %v3154_v8, 5 }
  0x78   : > { %v1136_v44 = vsel %vm3343_vm7, %v2607_v40, %v1135_v16  ;;  %v3494_v16 = vld [vmem:[%s3010_s11 + $0x48] sm:$0xff]  ;;  %v2609_v40 = vrot.slane %v3147_v2, 9 }
  0x79   : > { %v1226_v48 = vunpack.c.l.b16 %v1136_v44  ;;  %4218 = vst [vmem:[#allocation21_spill] sm:$0xff] %v3494_v16  ;;  %v1151_v58 = vrot.slane %v1149_v56, 4 }
  0x7a   : > { %v1150_v8 = vsel %vm3343_vm7, %v2609_v40, %v1149_v56  ;;  %v1159_v40 = vrot.slane %v3248_v53, 5 }
  0x7b   : > { %2639 = vmatmul.msk.bf16.vlgmr.msrb.gmra.mxu3 %vm724_vm3, %v2747_v0  ;;  %v3452_v14 = vpack.c.b16 %v1227_v49, %v1226_v48  ;;  %v1153_v48 = vsel %vm3343_vm7, %v1151_v58, %v1152_v63  ;;  %v1230_v2 = vunpack.c.l.b16 %v1150_v8 }
  0x80   : > { %2655 = vmatmul.msk.bf16.vlgmr.msrb.gmra.mxu0 %vm724_vm3, %v3193_v9  ;;  %v1122_v9 = vsel %vm3343_vm7, %v2605_v4, %v1121_v61  ;;  %v1142_v61 = vrot.slane %v3081_v31, 5 }
  0x81   : > { %v1222_v46 = vunpack.c.l.b16 %v1122_v9 }
  0x82   : > { %2588 = vmatmul.msk.bf16.gmra.mxu1 %vm724_vm3, %v2747_v0  ;;  %v1144_v9 = vrot.slane %v1142_v61, 4  ;;  %v1143_v31 = vsel %vm3343_vm7, %v2608_v17, %v1142_v61  ;;  %v1231_v61 = vunpack.c.l.b16 %v1153_v48 }
  0x83   : > { %v3404_v36 = vpack.c.b16 %v1223_v55, %v1222_v46  ;;  %v1228_v27 = vunpack.c.l.b16 %v1143_v31 }
  0x84   : > { %v1146_v60 = vsel %vm3343_vm7, %v1144_v9, %v1145_v57  ;;  %v3518_v9 = vpack.c.b16 %v1231_v61, %v1230_v2  ;;  %v1156_v57 = vrot.slane %v3240_v33, 5 }
  0x85   : > { %v1229_v35 = vunpack.c.l.b16 %v1146_v60 }
  0x86   : > { %2620 = vmatmul.msk.bf16.gmra.mxu2 %vm724_vm3, %v3378_v34  ;;  %4221 = vst [vmem:[#allocation24_spill] sm:$0xff] %v3518_v9  ;;  %v1158_v56 = vrot.slane %v1156_v57, 4 }
  0x87   : > { %v3484_v42 = vpack.c.b16 %v1229_v35, %v1228_v27  ;;  %v3528_v27 = vld [vmem:[%s3010_s11 + $0x54] sm:$0xff]  ;;  %v2610_v35 = vrot.slane %v3231_v13, 9 }
  0x88   : > { %4222 = vst [vmem:[#allocation25_spill] sm:$0xff] %v3528_v27  ;;  %v1160_v8 = vsel %vm3343_vm7, %v1158_v56, %v1159_v40 }
  0x89   : > { %v1157_v33 = vsel %vm3343_vm7, %v2610_v35, %v1156_v57  ;;  %v1233_v53 = vunpack.c.l.b16 %v1160_v8  ;;  %v2827_v35 = vld [vmem:[%s3010_s11 + $0x64] sm:$0xf]  ;;  %v2828_v8 = vld [vmem:[%s3010_s11 + $0x68] sm:$0x1] }
  0x8a   : > { %v1232_v48 = vunpack.c.l.b16 %v1157_v33  ;;  %v1163_v56 = vrot.slane %v2827_v35, 5 }
  0x8b   : > { %2640 = vmatmul.msk.bf16.gmra.mxu3 %vm724_vm3, %v3390_v15 }
  0x8c   : > { %v3550_v61 = vpack.c.b16 %v1233_v53, %v1232_v48 }
  0x8e   : > { %4224 = vst [vmem:[#allocation27_spill] sm:$0xff] %v3550_v61 }
  0x90   : > { %2656 = vmatmul.msk.bf16.gmra.mxu0 %vm724_vm3, %v3281_v23 }
  0x92   : > { %2589 = vmatmul.msk.bf16.gmra.mxu1 %vm724_vm3, %v3390_v15 }
  0x96   : > { %2621 = vmatmul.msk.bf16.gmra.mxu2 %vm724_vm3, %v3404_v36 }
  0x9b   : > { %2641 = vmatmul.msk.bf16.gmra.mxu3 %vm724_vm3, %v3410_v62 }
  0xa0   : > { %2657 = vmatmul.msk.bf16.gmra.mxu0 %vm724_vm3, %v3367_v6 }
  0xa2   : > { %2590 = vmatmul.msk.bf16.gmra.mxu1 %vm724_vm3, %v3410_v62 }
  0xa6   : > { %v3427_v24 = vpop.f32.mrf.mxu1  ;;  %2622 = vmatmul.msk.bf16.gmra.mxu2 %vm724_vm3, %v3424_v39 }
  0xab   : > { %2642 = vmatmul.msk.bf16.gmra.mxu3 %vm724_vm3, %v3432_v25 }
  0xae   : > { %v3444_v0 = vpop.f32.mrf.mxu1 }
  0xb0   : > { %v3442_v18 = vpop.f32.mrf.mxu2  ;;  %2658 = vmatmul.msk.bf16.gmra.mxu0 %vm724_vm3, %v3052_v1 }
  0xb2   : > { %2591 = vmatmul.msk.bf16.gmra.mxu1 %vm724_vm3, %v3432_v25 }
  0xb4   : > { %v3450_v11 = vpop.f32.mrf.mxu0  ;;  %v3455_v4 = vpop.f32.mrf.mxu3 }
  0xb5   : > { %4216 = vst [vmem:[#allocation19_spill] sm:$0xff] %v3455_v4 }
  0xb6   : > { %2623 = vmatmul.msk.bf16.gmra.mxu2 %vm724_vm3, %v3452_v14 }
  0xb8   : > { %v3464_v46 = vpop.f32.mrf.mxu2 }
  0xb9   : > { %v3466_v55 = vpop.f32.mrf.mxu1 }
  0xbb   : > { %2643 = vmatmul.msk.bf16.gmra.mxu3 %vm724_vm3, %v3460_v21 }
  0xbc   : > { %v3474_v59 = vpop.f32.mrf.mxu0  ;;  %v3476_v26 = vpop.f32.mrf.mxu3 }
  0xbd   : > { %4217 = vst [vmem:[#allocation20_spill] sm:$0xff] %v3476_v26 }
  0xc0   : > { %2659 = vmatmul.msk.bf16.gmra.mxu0 %vm724_vm3, %v3127_v45 }
  0xc1   : > { %v3480_v7 = vpop.f32.mrf.mxu1 }
  0xc2   : > { %2592 = vmatmul.msk.bf16.gmra.mxu1 %vm724_vm3, %v3460_v21 }
  0xc3   : > { %v3486_v52 = vpop.f32.mrf.mxu2 }
  0xc6   : > { %2624 = vmatmul.msk.bf16.gmra.mxu2 %vm724_vm3, %v3484_v42 }
  0xc7   : > { %v3489_v5 = vpop.f32.mrf.mxu0 }
  0xc9   : > { %v3498_v44 = vpop.f32.mrf.mxu3 }
  0xca   : > { %4219 = vst [vmem:[#allocation22_spill] sm:$0xff] %v3498_v44 }
  0xcb   : > { %v3500_v12 = vpop.f32.mrf.mxu1  ;;  %2644 = vmatmul.msk.bf16.gmra.mxu3 %vm724_vm3, %v3494_v16  ;;  %v3508_v49 = vpop.f32.mrf.mxu2 }
  0xcf   : > { %v3512_v19 = vpop.f32.mrf.mxu0 }
  0xd0   : > { %2660 = vmatmul.msk.bf16.gmra.mxu0 %vm724_vm3, %v3214_v37 }
  0xd1   : > { %v3514_v17 = vpop.f32.mrf.mxu3 }
  0xd2   : > { %4220 = vst [vmem:[#allocation23_spill] sm:$0xff] %v3514_v17  ;;  %2593 = vmatmul.msk.bf16.gmra.mxu1 %vm724_vm3, %v3494_v16  ;;  %v3563_v17 = vld [vmem:[%s3010_s11 + $0x60] sm:$0xff] }
  0xd3   : > { %v3521_v31 = vpop.f32.mrf.mxu1  ;;  %4226 = vst [vmem:[#allocation29_spill] sm:$0xff] %v3563_v17 }
  0xd6   : > { %2625 = vmatmul.msk.bf16.gmra.mxu2 %vm724_vm3, %v3518_v9 }
  0xd7   : > { %v3525_v60 = vpop.f32.mrf.mxu2 }
  0xda   : > { %v3532_v58 = vpop.f32.mrf.mxu0 }
  0xdb   : > { %v3534_v63 = vpop.f32.mrf.mxu3  ;;  %2645 = vmatmul.msk.bf16.gmra.mxu3 %vm724_vm3, %v3528_v27 }
  0xdc   : > { %4223 = vst [vmem:[#allocation26_spill] sm:$0xff] %v3534_v63  ;;  %v1166_v63 = vrot.slane %v2828_v8, 5 }
  0xdf   : > { %v3542_v13 = vpop.f32.mrf.mxu1  ;;  %v3544_v2 = vpop.f32.mrf.mxu2 }
  0xe0   : > { %2661 = vmatmul.msk.bf16.gmra.mxu0 %vm724_vm3, %v3302_v32  ;;  %v2829_v32 = vld [vmem:[%s3010_s11 + $0x60] sm:$0xf] }
  0xe1   : > { %v2611_v44 = vrot.slane %v2829_v32, 9 }
  0xe2   : > { %2594 = vmatmul.msk.bf16.gmra.mxu1 %vm724_vm3, %v3528_v27  ;;  %v3552_v57 = vpop.f32.mrf.mxu0  ;;  %v1165_v27 = vrot.slane %v1163_v56, 4 }
  0xe3   : > { %v3555_v40 = vpop.f32.mrf.mxu3  ;;  %v1164_v53 = vsel %vm3343_vm7, %v2611_v44, %v1163_v56 }
  0xe4   : > { %4225 = vst [vmem:[#allocation28_spill] sm:$0xff] %v3555_v40  ;;  %v1167_v35 = vsel %vm3343_vm7, %v1165_v27, %v1166_v63  ;;  %v1234_v26 = vunpack.c.l.b16 %v1164_v53  ;;  %v1170_v27 = vrot.slane %v3100_v50, 5  ;;  %v3596_v53 = vld [vmem:[%s3010_s11 + $0x6c] sm:$0xff] }
  0xe5   : > { %v1235_v32 = vunpack.c.l.b16 %v1167_v35 }
  0xe6   : > { %2626 = vmatmul.msk.bf16.gmra.mxu2 %vm724_vm3, %v3550_v61 }
  0xe7   : > { %v3559_v33 = vpop.f32.mrf.mxu1  ;;  %v3585_v44 = vpack.c.b16 %v1235_v32, %v1234_v26  ;;  %v1172_v26 = vrot.slane %v1170_v27, 4 }
  0xe9   : > { %v3566_v48 = vpop.f32.mrf.mxu2  ;;  %4228 = vst [vmem:[#allocation31_spill] sm:$0xff] %v3585_v44 }
  0xeb   : > { %2646 = vmatmul.msk.bf16.gmra.mxu3 %vm724_vm3, %v3563_v17 }
  0xed   : > { %v3574_v40 = vpop.f32.mrf.mxu0 }
  0xee   : > { %v3576_v8 = vpop.f32.mrf.mxu3 }
  0xef   : > { %4227 = vst [vmem:[#allocation30_spill] sm:$0xff] %v3576_v8  ;;  %v1006_v61 = vpop.f32.mrf.mxu1  ;;  %v2612_v8 = vrot.slane %v3091_v41, 9 }
  0xf0   : > { %v1007_v9 = vadd.f32 %v1006_v61, %v3450_v11  ;;  %2662 = vmatmul.msk.bf16.gmra.mxu0 %vm724_vm3, %v3070_v22  ;;  %v1173_v61 = vrot.slane %v3107_v54, 5 }
  0xf1   : > { %v3581_v37 = vpop.f32.mrf.mxu2  ;;  %v1171_v50 = vsel %vm3343_vm7, %v2612_v8, %v1170_v27 }
  0xf2   : > { %2595 = vmatmul.msk.bf16.gmra.mxu1 %vm724_vm3, %v3563_v17  ;;  %v1236_v4 = vunpack.c.l.b16 %v1171_v50 }
  0xf5   : > { %v3588_v63 = vpop.f32.mrf.mxu0 }
  0xf6   : > { %v3590_v56 = vpop.f32.mrf.mxu3  ;;  %2627 = vmatmul.msk.bf16.gmra.mxu2 %vm724_vm3, %v3585_v44 }
  0xf7   : > { %4229 = vst [vmem:[#allocation32_spill] sm:$0xff] %v3590_v56  ;;  %v1008_v11 = vpop.f32.mrf.mxu1  ;;  %v1174_v56 = vsel %vm3343_vm7, %v1172_v26, %v1173_v61  ;;  %v1177_v61 = vrot.slane %v3176_v47, 5 }
  0xf8   : > { %v1009_v35 = vadd.f32 %v1008_v11, %v3474_v59  ;;  %v1237_v16 = vunpack.c.l.b16 %v1174_v56  ;;  %v1180_v56 = vrot.slane %v3179_v51, 5 }
  0xf9   : > { %v1326_v32 = vpop.f32.mrf.mxu2 }
  0xfa   : > { %v1406_v22 = vadd.f32 %v1326_v32, %v1007_v9  ;;  %v3613_v11 = vpack.c.b16 %v1237_v16, %v1236_v4  ;;  %v3620_v32 = vld [vmem:[%s3010_s11 + $0x78] sm:$0xff] }
  0xfb   : > { %2647 = vmatmul.msk.bf16.gmra.mxu3 %vm724_vm3, %v3596_v53 }
  0xfd   : > { %v1618_v44 = vpop.f32.mrf.mxu0 }
  0xfe   : > { %v1463_v54 = vpop.f32.mrf.mxu3 }
  0xff   : > { %v1011_v17 = vpop.f32.mrf.mxu1  ;;  %v1543_v59 = vadd.f32 %v1463_v54, %v1406_v22 }
 0x100   : > { %v1012_v41 = vadd.f32 %v1011_v17, %v3489_v5  ;;  %2663 = vmatmul.msk.bf16.gmra.mxu0 %vm724_vm3, %v3149_v3 }
 0x101   : > { %v1328_v9 = vpop.f32.mrf.mxu2  ;;  %v3611_v8 = vadd.f32 %v1618_v44, %v1543_v59  ;;  %v2613_v44 = vrot.slane %v3168_v28, 9 }
 0x102   : > { %2596 = vmatmul.msk.bf16.gmra.mxu1 %vm724_vm3, %v3596_v53  ;;  %v1407_v27 = vadd.f32 %v1328_v9, %v1009_v35  ;;  %v1179_v35 = vrot.slane %v1177_v61, 4 }
 0x103   : > { %v1178_v51 = vsel %vm3343_vm7, %v2613_v44, %v1177_v61 }
 0x104   : > { %v1181_v54 = vsel %vm3343_vm7, %v1179_v35, %v1180_v56  ;;  %v1187_v35 = vrot.slane %v3270_v43, 5 }
 0x105   : > { %v1620_v26 = vpop.f32.mrf.mxu0 }
 0x106   : > { %v1465_v22 = vpop.f32.mrf.mxu3  ;;  %2628 = vmatmul.msk.bf16.gmra.mxu2 %vm724_vm3, %v3613_v11 }
 0x107   : > { %v1013_v5 = vpop.f32.mrf.mxu1  ;;  %v1544_v17 = vadd.f32 %v1465_v22, %v1407_v27  ;;  %v1239_v22 = vunpack.c.l.b16 %v1181_v54 }
 0x108   : > { %v1014_v50 = vadd.f32 %v1013_v5, %v3512_v19  ;;  %v1238_v19 = vunpack.c.l.b16 %v1178_v51  ;;  %v3646_v51 = vld [vmem:[%s3010_s11 + $0x84] sm:$0xff] }
 0x109   : > { %v1331_v4 = vpop.f32.mrf.mxu2  ;;  %v3624_v16 = vadd.f32 %v1620_v26, %v1544_v17  ;;  %v1184_v17 = vrot.slane %v3263_v30, 5 }
 0x10a   : > { %v1408_v47 = vadd.f32 %v1331_v4, %v1012_v41  ;;  %v3639_v56 = vpack.c.b16 %v1239_v22, %v1238_v19 }
 0x10b   : > { %2648 = vmatmul.msk.bf16.gmra.mxu3 %vm724_vm3, %v3620_v32 }
 0x10d   : > { %v1623_v59 = vpop.f32.mrf.mxu0 }
 0x10e   : > { %v1468_v9 = vpop.f32.mrf.mxu3 }
 0x10f   : > { %v1016_v27 = vpop.f32.mrf.mxu1  ;;  %v1545_v28 = vadd.f32 %v1468_v9, %v1408_v47 }
 0x110   : > { %v1017_v26 = vadd.f32 %v1016_v27, %v3532_v58  ;;  %2664 = vmatmul.msk.bf16.gmra.mxu0 %vm724_vm3, %v3237_v29 }
 0x111   : > { %v1333_v41 = vpop.f32.mrf.mxu2  ;;  %v3637_v61 = vadd.f32 %v1623_v59, %v1545_v28  ;;  %v4230_v59 = vld [vmem:[#allocation12_spill] sm:$0xff] }
 0x112   : > { %2597 = vmatmul.msk.bf16.gmra.mxu1 %vm724_vm3, %v3620_v32  ;;  %v1409_v5 = vadd.f32 %v1333_v41, %v1014_v50  ;;  %v2614_v9 = vrot.slane %v4230_v59, 9  ;;  %v1186_v50 = vrot.slane %v1184_v17, 4 }
 0x114   : > { %v1185_v43 = vsel %vm3343_vm7, %v2614_v9, %v1184_v17  ;;  %v1188_v22 = vsel %vm3343_vm7, %v1186_v50, %v1187_v35  ;;  %v2830_v9 = vld [vmem:[%s3010_s11 + $0x94] sm:$0xf] }
 0x115   : > { %v1625_v44 = vpop.f32.mrf.mxu0  ;;  %v1191_v50 = vrot.slane %v2830_v9, 5 }
 0x116   : > { %v1470_v4 = vpop.f32.mrf.mxu3  ;;  %2629 = vmatmul.msk.bf16.gmra.mxu2 %vm724_vm3, %v3639_v56 }
 0x117   : > { %v1018_v58 = vpop.f32.mrf.mxu1  ;;  %v1546_v47 = vadd.f32 %v1470_v4, %v1409_v5  ;;  %v1240_v5 = vunpack.c.l.b16 %v1185_v43  ;;  %v1241_v4 = vunpack.c.l.b16 %v1188_v22 }
 0x118   : > { %v1019_v54 = vadd.f32 %v1018_v58, %v3552_v57 }
 0x119   : > { %v1336_v27 = vpop.f32.mrf.mxu2  ;;  %v3650_v19 = vadd.f32 %v1625_v44, %v1546_v47  ;;  %v3665_v59 = vpack.c.b16 %v1241_v4, %v1240_v5 }
 0x11a   : > { %v1410_v30 = vadd.f32 %v1336_v27, %v1017_v26  ;;  %v4232_v26 = vld [vmem:[#allocation18_spill] sm:$0xff] }
 0x11b   : > { %4231 = vst [vmem:[#allocation12_spill] sm:$0xff] %v3650_v19  ;;  %2649 = vmatmul.msk.bf16.gmra.mxu3 %vm724_vm3, %v3646_v51 }
 0x11c   : > { %4234 = vst [vmem:[#allocation34_spill] sm:$0xff] %v3665_v59 }
 0x11d   : > { %v1628_v28 = vpop.f32.mrf.mxu0 }
 0x11e   : > { %v1473_v57 = vpop.f32.mrf.mxu3 }
 0x11f   : > { %v1021_v41 = vpop.f32.mrf.mxu1  ;;  %v1547_v58 = vadd.f32 %v1473_v57, %v1410_v30  ;;  %v2831_v30 = vld [vmem:[%s3010_s11 + $0x98] sm:$0x1] }
 0x120   : > { %v1022_v44 = vadd.f32 %v1021_v41, %v3574_v40  ;;  %2665 = vmatmul.msk.bf16.gmra.mxu0 %vm724_vm3, %v4232_v26  ;;  %v1194_v43 = vrot.slane %v2831_v30, 5  ;;  %v3672_v41 = vld [vmem:[%s3010_s11 + $0x90] sm:$0xff] }
 0x121   : > { %v1338_v47 = vpop.f32.mrf.mxu2  ;;  %v3663_v17 = vadd.f32 %v1628_v28, %v1547_v58  ;;  %4235 = vst [vmem:[#allocation35_spill] sm:$0xff] %v3672_v41  ;;  %v2832_v28 = vld [vmem:[%s3010_s11 + $0x90] sm:$0xf] }
 0x122   : > { %2598 = vmatmul.msk.bf16.gmra.mxu1 %vm724_vm3, %v3646_v51  ;;  %v1411_v35 = vadd.f32 %v1338_v47, %v1019_v54  ;;  %v2615_v58 = vrot.slane %v2832_v28, 9  ;;  %v1193_v54 = vrot.slane %v1191_v50, 4 }
 0x123   : > { %4233 = vst [vmem:[#allocation33_spill] sm:$0xff] %v3663_v17 }
 0x124   : > { %v1192_v9 = vsel %vm3343_vm7, %v2615_v58, %v1191_v50  ;;  %v2833_v58 = vld [vmem:[%s3010_s11 + $0xa0] sm:$0xf] }
 0x125   : > { %v1630_v27 = vpop.f32.mrf.mxu0 }
 0x126   : > { %v1475_v40 = vpop.f32.mrf.mxu3  ;;  %2630 = vmatmul.msk.bf16.gmra.mxu2 %vm724_vm3, %v3665_v59  ;;  %v2835_v59 = vld [vmem:[%s3010_s11 + $0x9c] sm:$0xf] }
 0x127   : > { %v1023_v22 = vpop.f32.mrf.mxu1  ;;  %v1548_v57 = vadd.f32 %v1475_v40, %v1411_v35  ;;  %v1195_v35 = vsel %vm3343_vm7, %v1193_v54, %v1194_v43  ;;  %v1198_v54 = vrot.slane %v2833_v58, 5 }
 0x128   : > { %v1024_v19 = vadd.f32 %v1023_v22, %v3588_v63  ;;  %v1242_v22 = vunpack.c.l.b16 %v1192_v9  ;;  %v1243_v28 = vunpack.c.l.b16 %v1195_v35  ;;  %v2834_v35 = vld [vmem:[%s3010_s11 + $0xa4] sm:$0x1] }
 0x129   : > { %v1341_v5 = vpop.f32.mrf.mxu2  ;;  %v3676_v4 = vadd.f32 %v1630_v27, %v1548_v57  ;;  %v4237_v27 = vld [vmem:[#allocation6_spill] sm:$0xff] }
 0x12a   : > { %v1412_v47 = vadd.f32 %v1341_v5, %v1022_v44  ;;  %v3690_v43 = vpack.c.b16 %v1243_v28, %v1242_v22 }
 0x12b   : > { %4236 = vst [vmem:[#allocation36_spill] sm:$0xff] %v3676_v4  ;;  %2650 = vmatmul.msk.bf16.gmra.mxu3 %vm724_vm3, %v3672_v41 }
 0x12c   : > { %4239 = vst [vmem:[#allocation38_spill] sm:$0xff] %v3690_v43 }
 0x12d   : > { %v1633_v30 = vpop.f32.mrf.mxu0 }
 0x12e   : > { %v1478_v40 = vpop.f32.mrf.mxu3 }
 0x12f   : > { %v1026_v63 = vpop.f32.mrf.mxu1  ;;  %v1549_v17 = vadd.f32 %v1478_v40, %v1412_v47  ;;  %v1201_v40 = vrot.slane %v2834_v35, 5 }
 0x130   : > { %2666 = vmatmul.msk.bf16.gmra.mxu0 %vm724_vm3, %v4237_v27  ;;  %v3697_v27 = vld [vmem:[%s3010_s11 + $0x9c] sm:$0xff] }
 0x131   : > { %v1343_v44 = vpop.f32.mrf.mxu2  ;;  %v3688_v50 = vadd.f32 %v1633_v30, %v1549_v17  ;;  %4240 = vst [vmem:[#allocation39_spill] sm:$0xff] %v3697_v27  ;;  %v1200_v17 = vrot.slane %v1198_v54, 4 }
 0x132   : > { %2599 = vmatmul.msk.bf16.gmra.mxu1 %vm724_vm3, %v3672_v41  ;;  %v1413_v57 = vadd.f32 %v1343_v44, %v1024_v19  ;;  %v2616_v41 = vrot.slane %v2835_v59, 9  ;;  %v1027_v19 = vadd.f32 %v1026_v63, %v3427_v24  ;;  %v4242_v63 = vld [vmem:[#allocation7_spill] sm:$0xff] }
 0x133   : > { %4238 = vst [vmem:[#allocation37_spill] sm:$0xff] %v3688_v50 }
 0x134   : > { %v1199_v44 = vsel %vm3343_vm7, %v2616_v41, %v1198_v54 }
 0x135   : > { %v1635_v5 = vpop.f32.mrf.mxu0  ;;  %v1244_v59 = vunpack.c.l.b16 %v1199_v44 }
 0x136   : > { %v1480_v9 = vpop.f32.mrf.mxu3  ;;  %2631 = vmatmul.msk.bf16.gmra.mxu2 %vm724_vm3, %v3690_v43 }
 0x137   : > { %v1028_v47 = vpop.f32.mrf.mxu1  ;;  %v1550_v4 = vadd.f32 %v1480_v9, %v1413_v57  ;;  %v1202_v57 = vsel %vm3343_vm7, %v1200_v17, %v1201_v40  ;;  %v4245_v17 = vld [vmem:[#allocation9_spill] sm:$0xff] }
 0x138   : > { %v1245_v50 = vunpack.c.l.b16 %v1202_v57  ;;  %v4246_v57 = vld [vmem:[#allocation10_spill] sm:$0xff] }
 0x139   : > { %v1346_v30 = vpop.f32.mrf.mxu2  ;;  %v3701_v22 = vadd.f32 %v1635_v5, %v1550_v4  ;;  %v1029_v4 = vadd.f32 %v1028_v47, %v3444_v0  ;;  %v3723_v47 = vld [vmem:[%s3010_s11 + $0xa8] sm:$0xff] }
 0x13a   : > { %v1414_v28 = vadd.f32 %v1346_v30, %v1027_v19  ;;  %v3716_v40 = vpack.c.b16 %v1245_v50, %v1244_v59  ;;  %v1205_v19 = vrot.slane %v4245_v17, 5  ;;  %4247 = vst [vmem:[#allocation9_spill] sm:$0xff] %v3723_v47 }
 0x13b   : > { %4241 = vst [vmem:[#allocation40_spill] sm:$0xff] %v3701_v22  ;;  %2651 = vmatmul.msk.bf16.gmra.mxu3 %vm724_vm3, %v3697_v27  ;;  %v4248_v22 = vld [vmem:[#allocation8_spill] sm:$0xff] }
 0x13c   : > { %4244 = vst [vmem:[#allocation42_spill] sm:$0xff] %v3716_v40 }
 0x13d   : > { %v1638_v58 = vpop.f32.mrf.mxu0 }
 0x13e   : > { %v1483_v9 = vpop.f32.mrf.mxu3 }
 0x13f   : > { %v1031_v35 = vpop.f32.mrf.mxu1  ;;  %v1551_v24 = vadd.f32 %v1483_v9, %v1414_v28  ;;  %v1208_v9 = vrot.slane %v4246_v57, 5 }
 0x140   : > { %2667 = vmatmul.msk.bf16.gmra.mxu0 %vm724_vm3, %v4242_v63  ;;  %v2617_v63 = vrot.slane %v4248_v22, 9 }
 0x141   : > { %v1348_v5 = vpop.f32.mrf.mxu2  ;;  %v3714_v41 = vadd.f32 %v1638_v58, %v1551_v24  ;;  %v1207_v58 = vrot.slane %v1205_v19, 4  ;;  %v1032_v24 = vadd.f32 %v1031_v35, %v3466_v55 }
 0x142   : > { %2600 = vmatmul.msk.bf16.gmra.mxu1 %vm724_vm3, %v3697_v27  ;;  %v1415_v54 = vadd.f32 %v1348_v5, %v1029_v4  ;;  %v1206_v5 = vsel %vm3343_vm7, %v2617_v63, %v1205_v19  ;;  %v3741_v63 = vld [vmem:[%s3010_s11 + $0xc0] sm:$0xf] }
 0x143   : > { %4243 = vst [vmem:[#allocation41_spill] sm:$0xff] %v3714_v41  ;;  %v1246_v57 = vunpack.c.l.b16 %v1206_v5  ;;  %v4250_v41 = vld [vmem:[#allocation13_spill] sm:$0xff]  ;;  %v1576_v5 = vshrl.u32 %v3741_v63, 16 }
 0x144   : > { %4251 = vst [vmem:[#allocation8_spill] sm:$0xff] %v3741_v63 }
 0x145   : > { %v1640_v30 = vpop.f32.mrf.mxu0 }
 0x146   : > { %v1485_v44 = vpop.f32.mrf.mxu3  ;;  %2632 = vmatmul.msk.bf16.gmra.mxu2 %vm724_vm3, %v3716_v40 }
 0x147   : > { %v1033_v28 = vpop.f32.mrf.mxu1  ;;  %v1552_v0 = vadd.f32 %v1485_v44, %v1415_v54  ;;  %v1209_v54 = vsel %vm3343_vm7, %v1207_v58, %v1208_v9 }
 0x148   : > { %v1247_v55 = vunpack.c.l.b16 %v1209_v54 }
 0x149   : > { %v1351_v50 = vpop.f32.mrf.mxu2  ;;  %v3727_v59 = vadd.f32 %v1640_v30, %v1552_v0  ;;  %v1034_v30 = vadd.f32 %v1033_v28, %v3480_v7  ;;  %v1579_v7 = vshll.u32 %v3741_v63, 16 }
 0x14a   : > { %v1416_v4 = vadd.f32 %v1351_v50, %v1032_v24  ;;  %v3745_v58 = vpack.c.b16 %v1247_v55, %v1246_v57  ;;  %v3748_v24 = vld [vmem:[%s3010_s11 + $0xc4] sm:$0xf]  ;;  %v4255_v50 = vld [vmem:[#allocation15_spill] sm:$0xff]  ;;  %v4256_v57 = vld [vmem:[#allocation16_spill] sm:$0xff] }
 0x14b   : > { %4249 = vst [vmem:[#allocation10_spill] sm:$0xff] %v3727_v59  ;;  %2652 = vmatmul.msk.bf16.gmra.mxu3 %vm724_vm3, %v3723_v47  ;;  %v1585_v28 = vshll.u32 %v3748_v24, 16  ;;  %v1215_v55 = vrot.slane %v4256_v57, 5  ;;  %v1581_v40 = vrot.slane %v1579_v7, 5 }
 0x14c   : > { %4253 = vst [vmem:[#allocation44_spill] sm:$0xff] %v3745_v58 }
 0x14d   : > { %v1643_v17 = vpop.f32.mrf.mxu0  ;;  %4254 = vst [vmem:[#allocation45_spill] sm:$0xff] %v3748_v24 }
 0x14e   : > { %v1488_v22 = vpop.f32.mrf.mxu3 }
 0x14f   : > { %v1036_v44 = vpop.f32.mrf.mxu1  ;;  %v1553_v35 = vadd.f32 %v1488_v22, %v1416_v4  ;;  %v1212_v4 = vrot.slane %v4255_v50, 5  ;;  %v1589_v22 = vshrl.u32 %v3748_v24, 16  ;;  %v1587_v24 = vrot.slane %v1585_v28, 5 }
 0x150   : > { %2668 = vmatmul.msk.bf16.gmra.mxu0 %vm724_vm3, %v4250_v41  ;;  %v1037_v63 = vadd.f32 %v1036_v44, %v3500_v12  ;;  %v1578_v41 = vrot.slane %v1576_v5, 4 }
 0x151   : > { %v1353_v0 = vpop.f32.mrf.mxu2  ;;  %v3743_v19 = vadd.f32 %v1643_v17, %v1553_v35  ;;  %v1591_v27 = vrot.slane %v1589_v22, 4 }
 0x152   : > { %2601 = vmatmul.msk.bf16.gmra.mxu1 %vm724_vm3, %v3723_v47  ;;  %v1417_v9 = vadd.f32 %v1353_v0, %v1034_v30  ;;  %v3759_v30 = vld [vmem:[%s3010_s11 + $0xb4] sm:$0xff]  ;;  %v4257_v0 = vld [vmem:[#allocation14_spill] sm:$0xff]  ;;  %v1582_v44 = vor.u32 %v1581_v40, %v1578_v41 }
 0x153   : > { %4252 = vst [vmem:[#allocation43_spill] sm:$0xff] %v3743_v19  ;;  %v2618_v50 = vrot.slane %v4257_v0, 9  ;;  %v1214_v19 = vrot.slane %v1212_v4, 4  ;;  %v1592_v5 = vor.u32 %v1591_v27, %v1587_v24 }
 0x155   : > { %v1645_v54 = vpop.f32.mrf.mxu0  ;;  %v1593_v41 = vrot.slane %v1592_v5, 4 }
 0x156   : > { %v1490_v59 = vpop.f32.mrf.mxu3  ;;  %2633 = vmatmul.msk.bf16.gmra.mxu2 %vm724_vm3, %v3745_v58  ;;  %v3766_v58 = vld [vmem:[%s3010_s11 + $0xc8] sm:$0x1] }
 0x157   : > { %v1038_v17 = vpop.f32.mrf.mxu1  ;;  %v1554_v35 = vadd.f32 %v1490_v59, %v1417_v9  ;;  %v1213_v59 = vsel %vm3343_vm7, %v2618_v50, %v1212_v4  ;;  %v1216_v9 = vsel %vm3343_vm7, %v1214_v19, %v1215_v55  ;;  %v1595_v7 = vshll.u32 %v3766_v58, 16 }
 0x158   : > { %v1248_v22 = vunpack.c.l.b16 %v1213_v59  ;;  %v1039_v57 = vadd.f32 %v1038_v17, %v3521_v31  ;;  %v1583_v19 = vrot.slane %v1582_v44, 4 }
 0x159   : > { %v1356_v47 = vpop.f32.mrf.mxu2  ;;  %v3763_v43 = vadd.f32 %v1645_v54, %v1554_v35  ;;  %v1597_v27 = vrot.slane %v1595_v7, 5 }
 0x15a   : > { %v1418_v26 = vadd.f32 %v1356_v47, %v1037_v63  ;;  %v1249_v47 = vunpack.c.l.b16 %v1216_v9  ;;  %v3791_v9 = vld [vmem:[%s3010_s11 + $0xc0] sm:$0xff] }
 0x15b   : > { %2653 = vmatmul.msk.bf16.gmra.mxu3 %vm724_vm3, %v3759_v30  ;;  %v1598_v31 = vsel %vm3040_vm4, %v1593_v41, %v1597_v27 }
 0x15c   : > { %v3782_v35 = vpack.c.b16 %v1249_v47, %v1248_v22  ;;  %v1601_v5 = vunpack.c.l.b16 %v1598_v31 }
 0x15d   : > { %v1648_v12 = vpop.f32.mrf.mxu0 }
 0x15e   : > { %v1493_v28 = vpop.f32.mrf.mxu3 }
 0x15f   : > { %v1041_v54 = vpop.f32.mrf.mxu1  ;;  %v1555_v63 = vadd.f32 %v1493_v28, %v1418_v26  ;;  %v1588_v26 = vsel %vm3040_vm4, %v1583_v19, %v1587_v24 }
 0x160   : > { %2669 = vmatmul.msk.bf16.gmra.mxu0 %vm724_vm3, %v3350_v10  ;;  %v1600_v44 = vunpack.c.l.b16 %v1588_v26 }
 0x161   : > { %v1358_v4 = vpop.f32.mrf.mxu2  ;;  %v3780_v40 = vadd.f32 %v1648_v12, %v1555_v63  ;;  %v1042_v12 = vadd.f32 %v1041_v54, %v3542_v13 }
 0x162   : > { %2602 = vmatmul.msk.bf16.gmra.mxu1 %vm724_vm3, %v3759_v30  ;;  %v1419_v55 = vadd.f32 %v1358_v4, %v1039_v57  ;;  %v3798_v24 = vpack.c.b16 %v1601_v5, %v1600_v44 }
 0x165   : > { %v1650_v0 = vpop.f32.mrf.mxu0 }
 0x166   : > { %v1495_v17 = vpop.f32.mrf.mxu3  ;;  %2634 = vmatmul.msk.bf16.gmra.mxu2 %vm724_vm3, %v3782_v35 }
 0x167   : > { %v1043_v50 = vpop.f32.mrf.mxu1  ;;  %v1556_v59 = vadd.f32 %v1495_v17, %v1419_v55 }
 0x168   : > { %v1044_v13 = vadd.f32 %v1043_v50, %v3559_v33 }
 0x169   : > { %v1361_v7 = vpop.f32.mrf.mxu2  ;;  %v3794_v28 = vadd.f32 %v1650_v0, %v1556_v59 }
 0x16a   : > { %v1420_v22 = vadd.f32 %v1361_v7, %v1042_v12 }
 0x16b   : > { %2654 = vmatmul.msk.bf16.gmra.mxu3 %vm724_vm3, %v3791_v9 }
 0x16d   : > { %v1653_v47 = vpop.f32.mrf.mxu0 }
 0x16e   : > { %v1498_v63 = vpop.f32.mrf.mxu3 }
 0x16f   : > { %v1046_v57 = vpop.f32.mrf.mxu1  ;;  %v1557_v4 = vadd.f32 %v1498_v63, %v1420_v22 }
 0x170   : > { %2670 = vmatmul.msk.bf16.gmra.mxu0 %vm724_vm3, %v3798_v24  ;;  %v1047_v31 = vadd.f32 %v1046_v57, %v3442_v18 }
 0x171   : > { %v1363_v54 = vpop.f32.mrf.mxu2  ;;  %v3805_v19 = vadd.f32 %v1653_v47, %v1557_v4 }
 0x172   : > { %2672 = vmatmul.msk.bf16.vlgmr.msra.gmra.mxu1 %vm724_vm3, %v3378_v34  ;;  %v1421_v41 = vadd.f32 %v1363_v54, %v1044_v13 }
 0x175   : > { %v1655_v27 = vpop.f32.mrf.mxu0 }
 0x176   : > { %v1500_v55 = vpop.f32.mrf.mxu3  ;;  %2692 = vmatmul.msk.bf16.vlgmr.msra.gmra.mxu2 %vm724_vm3, %v3390_v15 }
 0x177   : > { %v1048_v0 = vpop.f32.mrf.mxu1  ;;  %v1558_v26 = vadd.f32 %v1500_v55, %v1421_v41 }
 0x178   : > { %v1049_v15 = vadd.f32 %v1048_v0, %v3464_v46 }
 0x179   : > { %v1366_v17 = vpop.f32.mrf.mxu2  ;;  %v3810_v59 = vadd.f32 %v1655_v27, %v1558_v26 }
 0x17a   : > { %v1422_v33 = vadd.f32 %v1366_v17, %v1047_v31 }
 0x17b   : > { %2708 = vmatmul.msk.bf16.vlgmr.msra.gmra.mxu3 %vm724_vm3, %v3281_v23 }
 0x17d   : > { %v1658_v34 = vpop.f32.mrf.mxu0 }
 0x17e   : > { %v1503_v50 = vpop.f32.mrf.mxu3 }
 0x17f   : > { %v1051_v12 = vpop.f32.mrf.mxu1  ;;  %v1559_v44 = vadd.f32 %v1503_v50, %v1422_v33 }
 0x180   : > { %2725 = vmatmul.msk.bf16.vlgmr.msra.gmra.mxu0 %vm724_vm3, %v3404_v36  ;;  %v1052_v57 = vadd.f32 %v1051_v12, %v3486_v52 }
 0x181   : > { %v1368_v5 = vpop.f32.mrf.mxu2  ;;  %v3819_v18 = vadd.f32 %v1658_v34, %v1559_v44 }
 0x182   : > { %2673 = vmatmul.msk.bf16.gmra.mxu1 %vm724_vm3, %v3404_v36  ;;  %v1423_v7 = vadd.f32 %v1368_v5, %v1049_v15 }
 0x185   : > { %v1660_v22 = vpop.f32.mrf.mxu0 }
 0x186   : > { %v1505_v47 = vpop.f32.mrf.mxu3  ;;  %2693 = vmatmul.msk.bf16.gmra.mxu2 %vm724_vm3, %v3410_v62 }
 0x187   : > { %v1053_v23 = vpop.f32.mrf.mxu1  ;;  %v1560_v63 = vadd.f32 %v1505_v47, %v1423_v7 }
 0x188   : > { %v1054_v62 = vadd.f32 %v1053_v23, %v3508_v49 }
 0x189   : > { %v1371_v4 = vpop.f32.mrf.mxu2  ;;  %v3824_v13 = vadd.f32 %v1660_v22, %v1560_v63 }
 0x18a   : > { %v1424_v46 = vadd.f32 %v1371_v4, %v1052_v57 }
 0x18b   : > { %2709 = vmatmul.msk.bf16.gmra.mxu3 %vm724_vm3, %v3367_v6 }
 0x18d   : > { %v1663_v36 = vpop.f32.mrf.mxu0 }
 0x18e   : > { %v1508_v54 = vpop.f32.mrf.mxu3 }
 0x18f   : > { %v1056_v41 = vpop.f32.mrf.mxu1  ;;  %v1561_v27 = vadd.f32 %v1508_v54, %v1424_v46 }
 0x190   : > { %2726 = vmatmul.msk.bf16.gmra.mxu0 %vm724_vm3, %v3424_v39  ;;  %v1057_v33 = vadd.f32 %v1056_v41, %v3525_v60 }
 0x191   : > { %v1373_v55 = vpop.f32.mrf.mxu2  ;;  %v3833_v52 = vadd.f32 %v1663_v36, %v1561_v27 }
 0x192   : > { %2674 = vmatmul.msk.bf16.gmra.mxu1 %vm724_vm3, %v3424_v39  ;;  %v1425_v0 = vadd.f32 %v1373_v55, %v1054_v62 }
 0x195   : > { %v1665_v26 = vpop.f32.mrf.mxu0 }
 0x196   : > { %v1510_v31 = vpop.f32.mrf.mxu3  ;;  %2694 = vmatmul.msk.bf16.gmra.mxu2 %vm724_vm3, %v3432_v25 }
 0x197   : > { %v1058_v6 = vpop.f32.mrf.mxu1  ;;  %v1562_v17 = vadd.f32 %v1510_v31, %v1425_v0  ;;  %v4258_v0 = vld [vmem:[#allocation21_spill] sm:$0xff]  ;;  %v4259_v31 = vld [vmem:[#allocation19_spill] sm:$0xff] }
 0x198   : > { %v1059_v25 = vadd.f32 %v1058_v6, %v3544_v2 }
 0x199   : > { %v1376_v34 = vpop.f32.mrf.mxu2  ;;  %v3838_v50 = vadd.f32 %v1665_v26, %v1562_v17 }
 0x19a   : > { %v1426_v49 = vadd.f32 %v1376_v34, %v1057_v33  ;;  %v4260_v34 = vld [vmem:[#allocation11_spill] sm:$0xff] }
 0x19b   : > { %2710 = vmatmul.msk.bf16.gmra.mxu3 %vm724_vm3, %v3052_v1 }
 0x19d   : > { %v1668_v39 = vpop.f32.mrf.mxu0 }
 0x19e   : > { %v1513_v12 = vpop.f32.mrf.mxu3 }
 0x19f   : > { %v1061_v44 = vpop.f32.mrf.mxu1  ;;  %v1563_v15 = vadd.f32 %v1513_v12, %v1426_v49 }
 0x1a0   : > { %2727 = vmatmul.msk.bf16.gmra.mxu0 %vm724_vm3, %v3452_v14  ;;  %v1062_v63 = vadd.f32 %v1061_v44, %v3566_v48  ;;  %v4261_v44 = vld [vmem:[#allocation24_spill] sm:$0xff] }
 0x1a1   : > { %v1378_v5 = vpop.f32.mrf.mxu2  ;;  %v3847_v60 = vadd.f32 %v1668_v39, %v1563_v15  ;;  %v4262_v15 = vld [vmem:[#allocation20_spill] sm:$0xff] }
 0x1a2   : > { %2675 = vmatmul.msk.bf16.gmra.mxu1 %vm724_vm3, %v3452_v14  ;;  %v1427_v7 = vadd.f32 %v1378_v5, %v1059_v25 }
 0x1a5   : > { %v1670_v22 = vpop.f32.mrf.mxu0 }
 0x1a6   : > { %v1515_v47 = vpop.f32.mrf.mxu3  ;;  %2695 = vmatmul.msk.bf16.gmra.mxu2 %vm724_vm3, %v3460_v21 }
 0x1a7   : > { %v1063_v1 = vpop.f32.mrf.mxu1  ;;  %v1564_v23 = vadd.f32 %v1515_v47, %v1427_v7 }
 0x1a8   : > { %v1064_v21 = vadd.f32 %v1063_v1, %v3581_v37 }
 0x1a9   : > { %v1381_v57 = vpop.f32.mrf.mxu2  ;;  %v3852_v4 = vadd.f32 %v1670_v22, %v1564_v23  ;;  %v4263_v23 = vld [vmem:[#allocation25_spill] sm:$0xff] }
 0x1aa   : > { %v1428_v2 = vadd.f32 %v1381_v57, %v1062_v63 }
 0x1ab   : > { %2711 = vmatmul.msk.bf16.gmra.mxu3 %vm724_vm3, %v3127_v45 }
 0x1ad   : > { %v1673_v14 = vpop.f32.mrf.mxu0 }
 0x1ae   : > { %v1518_v46 = vpop.f32.mrf.mxu3 }
 0x1af   : > { %v1066_v36 = vpop.f32.mrf.mxu1  ;;  %v1565_v54 = vadd.f32 %v1518_v46, %v1428_v2  ;;  %v4264_v2 = vld [vmem:[#allocation22_spill] sm:$0xff] }
 0x1b0   : > { %2728 = vmatmul.msk.bf16.gmra.mxu0 %vm724_vm3, %v3484_v42  ;;  %v1067_v6 = vadd.f32 %v1066_v36, %v4259_v31 }
 0x1b1   : > { %v1383_v41 = vpop.f32.mrf.mxu2  ;;  %v3861_v48 = vadd.f32 %v1673_v14, %v1565_v54 }
 0x1b2   : > { %2676 = vmatmul.msk.bf16.gmra.mxu1 %vm724_vm3, %v3484_v42  ;;  %v1429_v27 = vadd.f32 %v1383_v41, %v1064_v21  ;;  %v4265_v21 = vld [vmem:[#allocation17_spill] sm:$0xff] }
 0x1b5   : > { %v1675_v62 = vpop.f32.mrf.mxu0 }
 0x1b6   : > { %v1520_v55 = vpop.f32.mrf.mxu3  ;;  %2696 = vmatmul.msk.bf16.gmra.mxu2 %vm724_vm3, %v4258_v0  ;;  %v4266_v0 = vld [vmem:[#allocation27_spill] sm:$0xff] }
 0x1b7   : > { %v1068_v45 = vpop.f32.mrf.mxu1  ;;  %v1566_v26 = vadd.f32 %v1520_v55, %v1429_v27 }
 0x1b8   : > { %v1069_v25 = vadd.f32 %v1068_v45, %v4262_v15  ;;  %v4267_v45 = vld [vmem:[#allocation23_spill] sm:$0xff] }
 0x1b9   : > { %v1386_v17 = vpop.f32.mrf.mxu2  ;;  %v3866_v33 = vadd.f32 %v1675_v62, %v1566_v26 }
 0x1ba   : > { %v1430_v37 = vadd.f32 %v1386_v17, %v1067_v6 }
 0x1bb   : > { %2712 = vmatmul.msk.bf16.gmra.mxu3 %vm724_vm3, %v4260_v34 }
 0x1bd   : > { %v1678_v42 = vpop.f32.mrf.mxu0 }
 0x1be   : > { %v1523_v49 = vpop.f32.mrf.mxu3 }
 0x1bf   : > { %v1071_v39 = vpop.f32.mrf.mxu1  ;;  %v1567_v12 = vadd.f32 %v1523_v49, %v1430_v37 }
 0x1c0   : > { %2729 = vmatmul.msk.bf16.gmra.mxu0 %vm724_vm3, %v4261_v44  ;;  %v1072_v14 = vadd.f32 %v1071_v39, %v4264_v2  ;;  %v4272_v2 = vld [vmem:[#allocation28_spill] sm:$0xff] }
 0x1c1   : > { %v1388_v5 = vpop.f32.mrf.mxu2  ;;  %v3875_v7 = vadd.f32 %v1678_v42, %v1567_v12  ;;  %v4268_v42 = vld [vmem:[#allocation29_spill] sm:$0xff]  ;;  %v4269_v12 = vld [vmem:[#allocation26_spill] sm:$0xff] }
 0x1c2   : > { %2677 = vmatmul.msk.bf16.gmra.mxu1 %vm724_vm3, %v4261_v44  ;;  %v1431_v22 = vadd.f32 %v1388_v5, %v1069_v25 }
 0x1c5   : > { %v1680_v47 = vpop.f32.mrf.mxu0 }
 0x1c6   : > { %v1525_v1 = vpop.f32.mrf.mxu3  ;;  %2697 = vmatmul.msk.bf16.gmra.mxu2 %vm724_vm3, %v4263_v23 }
 0x1c7   : > { %v1073_v63 = vpop.f32.mrf.mxu1  ;;  %v1568_v57 = vadd.f32 %v1525_v1, %v1431_v22  ;;  %v4270_v22 = vld [vmem:[#allocation5_spill] sm:$0xff] }
 0x1c8   : > { %v1074_v26 = vadd.f32 %v1073_v63, %v4267_v45 }
 0x1c9   : > { %v1391_v46 = vpop.f32.mrf.mxu2  ;;  %v3880_v36 = vadd.f32 %v1680_v47, %v1568_v57  ;;  %v4271_v57 = vld [vmem:[#allocation31_spill] sm:$0xff] }
 0x1ca   : > { %v1432_v54 = vadd.f32 %v1391_v46, %v1072_v14 }
 0x1cb   : > { %2713 = vmatmul.msk.bf16.gmra.mxu3 %vm724_vm3, %v4265_v21 }
 0x1cd   : > { %v1683_v41 = vpop.f32.mrf.mxu0 }
 0x1ce   : > { %v1528_v27 = vpop.f32.mrf.mxu3 }
 0x1cf   : > { %v1076_v62 = vpop.f32.mrf.mxu1  ;;  %v1569_v55 = vadd.f32 %v1528_v27, %v1432_v54 }
 0x1d0   : > { %2730 = vmatmul.msk.bf16.gmra.mxu0 %vm724_vm3, %v4266_v0  ;;  %v1077_v44 = vadd.f32 %v1076_v62, %v4269_v12 }
 0x1d1   : > { %v1393_v31 = vpop.f32.mrf.mxu2  ;;  %v3889_v6 = vadd.f32 %v1683_v41, %v1569_v55 }
 0x1d2   : > { %2678 = vmatmul.msk.bf16.gmra.mxu1 %vm724_vm3, %v4266_v0  ;;  %v1433_v17 = vadd.f32 %v1393_v31, %v1074_v26  ;;  %v4273_v0 = vld [vmem:[#allocation30_spill] sm:$0xff] }
 0x1d5   : > { %v1685_v37 = vpop.f32.mrf.mxu0 }
 0x1d6   : > { %v1530_v34 = vpop.f32.mrf.mxu3  ;;  %2698 = vmatmul.msk.bf16.gmra.mxu2 %vm724_vm3, %v4268_v42 }
 0x1d7   : > { %v1078_v49 = vpop.f32.mrf.mxu1  ;;  %v1570_v39 = vadd.f32 %v1530_v34, %v1433_v17 }
 0x1d8   : > { %v1079_v14 = vadd.f32 %v1078_v49, %v4272_v2 }
 0x1d9   : > { %v1396_v15 = vpop.f32.mrf.mxu2  ;;  %v3894_v25 = vadd.f32 %v1685_v37, %v1570_v39  ;;  %v4274_v39 = vld [vmem:[#allocation32_spill] sm:$0xff] }
 0x1da   : > { %v1434_v5 = vadd.f32 %v1396_v15, %v1077_v44 }
 0x1db   : > { %2714 = vmatmul.msk.bf16.gmra.mxu3 %vm724_vm3, %v4270_v22 }
 0x1dd   : > { %v1688_v47 = vpop.f32.mrf.mxu0 }
 0x1de   : > { %v1533_v1 = vpop.f32.mrf.mxu3 }
 0x1df   : > { %v1081_v23 = vpop.f32.mrf.mxu1  ;;  %v1571_v63 = vadd.f32 %v1533_v1, %v1434_v5 }
 0x1e0   : > { %2731 = vmatmul.msk.bf16.gmra.mxu0 %vm724_vm3, %v4271_v57  ;;  %v1082_v45 = vadd.f32 %v1081_v23, %v4273_v0 }
 0x1e1   : > { %v1398_v46 = vpop.f32.mrf.mxu2  ;;  %v3903_v54 = vadd.f32 %v1688_v47, %v1571_v63 }
 0x1e2   : > { %2679 = vmatmul.msk.bf16.gmra.mxu1 %vm724_vm3, %v4271_v57  ;;  %v1435_v21 = vadd.f32 %v1398_v46, %v1079_v14 }
 0x1e5   : > { %v1690_v41 = vpop.f32.mrf.mxu0 }
 0x1e6   : > { %v1535_v27 = vpop.f32.mrf.mxu3  ;;  %2699 = vmatmul.msk.bf16.gmra.mxu2 %vm724_vm3, %v3596_v53 }
 0x1e7   : > { %v1083_v62 = vpop.f32.mrf.mxu1  ;;  %v1572_v55 = vadd.f32 %v1535_v27, %v1435_v21 }
 0x1e8   : > { %v1084_v53 = vadd.f32 %v1083_v62, %v4274_v39 }
 0x1e9   : > { %v1401_v26 = vpop.f32.mrf.mxu2  ;;  %v3908_v31 = vadd.f32 %v1690_v41, %v1572_v55 }
 0x1ea   : > { %v1436_v17 = vadd.f32 %v1401_v26, %v1082_v45 }
 0x1eb   : > { %2715 = vmatmul.msk.bf16.gmra.mxu3 %vm724_vm3, %v3149_v3 }
 0x1ed   : > { %v1693_v37 = vpop.f32.mrf.mxu0 }
 0x1ee   : > { %v1538_v34 = vpop.f32.mrf.mxu3 }
 0x1ef   : > { %v1761_v42 = vpop.f32.mrf.mxu1  ;;  %v1573_v49 = vadd.f32 %v1538_v34, %v1436_v17 }
 0x1f0   : > { %2732 = vmatmul.msk.bf16.gmra.mxu0 %vm724_vm3, %v3613_v11  ;;  %v1841_v1 = vadd.f32 %v1761_v42, %v3611_v8 }
 0x1f1   : > { %v1403_v12 = vpop.f32.mrf.mxu2  ;;  %v3917_v44 = vadd.f32 %v1693_v37, %v1573_v49  ;;  %v4275_v37 = vld [vmem:[#allocation18_spill] sm:$0xff] }
 0x1f2   : > { %2680 = vmatmul.msk.bf16.gmra.mxu1 %vm724_vm3, %v3613_v11  ;;  %v1437_v15 = vadd.f32 %v1403_v12, %v1084_v53  ;;  %v4276_v12 = vld [vmem:[#allocation34_spill] sm:$0xff] }
 0x1f5   : > { %v1695_v5 = vpop.f32.mrf.mxu0 }
 0x1f6   : > { %v1540_v3 = vpop.f32.mrf.mxu3  ;;  %2700 = vmatmul.msk.bf16.gmra.mxu2 %vm724_vm3, %v3620_v32  ;;  %v3932_v32 = vld [vmem:[%s4154_s2] ss:$0 sm:$0xff] }
 0x1f7   : > { %v1763_v22 = vpop.f32.mrf.mxu1  ;;  %v1574_v47 = vadd.f32 %v1540_v3, %v1437_v15  ;;  %v4277_v15 = vld [vmem:[#allocation12_spill] sm:$0xff] }
 0x1f8   : > { %v1842_v21 = vadd.f32 %v1763_v22, %v3624_v16 }
 0x1f9   : > { %v1894_v23 = vpop.f32.mrf.mxu2  ;;  %v3922_v63 = vadd.f32 %v1695_v5, %v1574_v47 }
 0x1fa   : > { %v1974_v11 = vadd.f32 %v1894_v23, %v1841_v1  ;;  %v4278_v23 = vld [vmem:[#allocation35_spill] sm:$0xff] }
 0x1fb   : > { %2716 = vmatmul.msk.bf16.gmra.mxu3 %vm724_vm3, %v3237_v29 }
 0x1fd   : > { %v2192_v57 = vpop.f32.mrf.mxu0 }
 0x1fe   : > { %v2053_v2 = vpop.f32.mrf.mxu3 }
 0x1ff   : > { %v1766_v14 = vpop.f32.mrf.mxu1  ;;  %v2133_v46 = vadd.f32 %v2053_v2, %v1974_v11 }
 0x200   : > { %2733 = vmatmul.msk.bf16.gmra.mxu0 %vm724_vm3, %v3639_v56  ;;  %v1843_v26 = vadd.f32 %v1766_v14, %v3637_v61  ;;  %v4279_v14 = vld [vmem:[#allocation33_spill] sm:$0xff] }
 0x201   : > { %v2272_v8 = vadd.f32 %v2192_v57, %v2133_v46  ;;  %v1896_v29 = vpop.f32.mrf.mxu2 }
 0x202   : > { %2681 = vmatmul.msk.bf16.gmra.mxu1 %vm724_vm3, %v3639_v56  ;;  %v1975_v27 = vadd.f32 %v1896_v29, %v1842_v21  ;;  %v4280_v29 = vld [vmem:[#allocation6_spill] sm:$0xff] }
 0x203   : > { %v2308_v41 = vadd.f32 %v3932_v32, %v2272_v8 }
 0x205   : > { %2340 = vst [vmem:[%s3940_s9] sm:$0xff] %v2308_v41  ;;  %v2194_v62 = vpop.f32.mrf.mxu0 }
 0x206   : > { %v2055_v55 = vpop.f32.mrf.mxu3  ;;  %2701 = vmatmul.msk.bf16.gmra.mxu2 %vm724_vm3, %v3646_v51 }
 0x207   : > { %v1768_v0 = vpop.f32.mrf.mxu1  ;;  %v2134_v45 = vadd.f32 %v2055_v55, %v1975_v27 }
 0x208   : > { %v1844_v5 = vadd.f32 %v1768_v0, %v4277_v15  ;;  %v4284_v15 = vld [vmem:[#allocation37_spill] sm:$0xff] }
 0x209   : > { %v2273_v16 = vadd.f32 %v2194_v62, %v2134_v45  ;;  %v1899_v17 = vpop.f32.mrf.mxu2  ;;  %v4281_v45 = vld [vmem:[#allocation38_spill] sm:$0xff] }
 0x20a   : > { %v1976_v34 = vadd.f32 %v1899_v17, %v1843_v26  ;;  %v4282_v26 = vld [vmem:[#allocation36_spill] sm:$0xff] }
 0x20b   : > { %v2309_v56 = vadd.f32 %v3932_v32, %v2273_v16  ;;  %2717 = vmatmul.msk.bf16.gmra.mxu3 %vm724_vm3, %v4275_v37 }
 0x20d   : > { %2341 = vst [vmem:[%s3940_s9 + $0x8] sm:$0xff] %v2309_v56  ;;  %v2197_v42 = vpop.f32.mrf.mxu0 }
 0x20e   : > { %v2058_v49 = vpop.f32.mrf.mxu3 }
 0x20f   : > { %v1771_v39 = vpop.f32.mrf.mxu1  ;;  %v2135_v53 = vadd.f32 %v2058_v49, %v1976_v34 }
 0x210   : > { %2734 = vmatmul.msk.bf16.gmra.mxu0 %vm724_vm3, %v4276_v12  ;;  %v1845_v46 = vadd.f32 %v1771_v39, %v4279_v14  ;;  %v4283_v39 = vld [vmem:[#allocation39_spill] sm:$0xff] }
 0x211   : > { %v2274_v51 = vadd.f32 %v2197_v42, %v2135_v53  ;;  %v1901_v61 = vpop.f32.mrf.mxu2 }
 0x212   : > { %2682 = vmatmul.msk.bf16.gmra.mxu1 %vm724_vm3, %v4276_v12  ;;  %v1977_v22 = vadd.f32 %v1901_v61, %v1844_v5 }
 0x213   : > { %v2310_v3 = vadd.f32 %v3932_v32, %v2274_v51 }
 0x215   : > { %2342 = vst [vmem:[%s3940_s9 + $0x10] sm:$0xff] %v2310_v3  ;;  %v2199_v47 = vpop.f32.mrf.mxu0 }
 0x216   : > { %v2060_v1 = vpop.f32.mrf.mxu3  ;;  %2702 = vmatmul.msk.bf16.gmra.mxu2 %vm724_vm3, %v4278_v23 }
 0x217   : > { %v1773_v11 = vpop.f32.mrf.mxu1  ;;  %v2136_v57 = vadd.f32 %v2060_v1, %v1977_v22  ;;  %v4285_v22 = vld [vmem:[#allocation7_spill] sm:$0xff] }
 0x218   : > { %v1846_v17 = vadd.f32 %v1773_v11, %v4282_v26  ;;  %v4289_v26 = vld [vmem:[#allocation41_spill] sm:$0xff] }
 0x219   : > { %v2275_v2 = vadd.f32 %v2199_v47, %v2136_v57  ;;  %v1904_v8 = vpop.f32.mrf.mxu2 }
 0x21a   : > { %v1978_v41 = vadd.f32 %v1904_v8, %v1845_v46  ;;  %v4287_v46 = vld [vmem:[#allocation40_spill] sm:$0xff] }
 0x21b   : > { %v2311_v21 = vadd.f32 %v3932_v32, %v2275_v2  ;;  %2718 = vmatmul.msk.bf16.gmra.mxu3 %vm724_vm3, %v4280_v29  ;;  %v4286_v2 = vld [vmem:[#allocation42_spill] sm:$0xff] }
 0x21d   : > { %2343 = vst [vmem:[%s3940_s9 + $0x18] sm:$0xff] %v2311_v21  ;;  %v2202_v27 = vpop.f32.mrf.mxu0 }
 0x21e   : > { %v2063_v62 = vpop.f32.mrf.mxu3 }
 0x21f   : > { %v1776_v55 = vpop.f32.mrf.mxu1  ;;  %v2137_v0 = vadd.f32 %v2063_v62, %v1978_v41 }
 0x220   : > { %2735 = vmatmul.msk.bf16.gmra.mxu0 %vm724_vm3, %v4281_v45  ;;  %v1847_v5 = vadd.f32 %v1776_v55, %v4284_v15  ;;  %v4288_v55 = vld [vmem:[#allocation9_spill] sm:$0xff] }
 0x221   : > { %v2276_v16 = vadd.f32 %v2202_v27, %v2137_v0  ;;  %v1906_v56 = vpop.f32.mrf.mxu2 }
 0x222   : > { %2683 = vmatmul.msk.bf16.gmra.mxu1 %vm724_vm3, %v4281_v45  ;;  %v1979_v34 = vadd.f32 %v1906_v56, %v1846_v17 }
 0x223   : > { %v2312_v37 = vadd.f32 %v3932_v32, %v2276_v16 }
 0x225   : > { %2344 = vst [vmem:[%s3940_s9 + $0x20] sm:$0xff] %v2312_v37  ;;  %v2204_v42 = vpop.f32.mrf.mxu0 }
 0x226   : > { %v2065_v49 = vpop.f32.mrf.mxu3  ;;  %2703 = vmatmul.msk.bf16.gmra.mxu2 %vm724_vm3, %v4283_v39 }
 0x227   : > { %v1778_v53 = vpop.f32.mrf.mxu1  ;;  %v2138_v12 = vadd.f32 %v2065_v49, %v1979_v34  ;;  %v4290_v34 = vld [vmem:[#allocation13_spill] sm:$0xff] }
 0x228   : > { %v1848_v8 = vadd.f32 %v1778_v53, %v4287_v46 }
 0x229   : > { %v2277_v51 = vadd.f32 %v2204_v42, %v2138_v12  ;;  %v1909_v61 = vpop.f32.mrf.mxu2 }
 0x22a   : > { %v1980_v47 = vadd.f32 %v1909_v61, %v1847_v5  ;;  %v4292_v5 = vld [vmem:[#allocation10_spill] sm:$0xff] }
 0x22b   : > { %v2313_v3 = vadd.f32 %v3932_v32, %v2277_v51  ;;  %2719 = vmatmul.msk.bf16.gmra.mxu3 %vm724_vm3, %v4285_v22  ;;  %v4291_v51 = vld [vmem:[#allocation44_spill] sm:$0xff] }
 0x22d   : > { %2345 = vst [vmem:[%s3940_s9 + $0x28] sm:$0xff] %v2313_v3  ;;  %v2207_v1 = vpop.f32.mrf.mxu0 }
 0x22e   : > { %v2068_v23 = vpop.f32.mrf.mxu3 }
 0x22f   : > { %v1781_v11 = vpop.f32.mrf.mxu1  ;;  %v2139_v57 = vadd.f32 %v2068_v23, %v1980_v47 }
 0x230   : > { %2736 = vmatmul.msk.bf16.gmra.mxu0 %vm724_vm3, %v4286_v2  ;;  %v1849_v17 = vadd.f32 %v1781_v11, %v4289_v26  ;;  %v4295_v26 = vld [vmem:[#allocation8_spill] sm:$0xff] }
 0x231   : > { %v2278_v14 = vadd.f32 %v2207_v1, %v2139_v57  ;;  %v1911_v21 = vpop.f32.mrf.mxu2 }
 0x232   : > { %2684 = vmatmul.msk.bf16.gmra.mxu1 %vm724_vm3, %v4286_v2  ;;  %v1981_v41 = vadd.f32 %v1911_v21, %v1848_v8 }
 0x233   : > { %v2314_v29 = vadd.f32 %v3932_v32, %v2278_v14  ;;  %v4293_v14 = vld [vmem:[#allocation43_spill] sm:$0xff] }
 0x235   : > { %2346 = vst [vmem:[%s3940_s9 + $0x30] sm:$0xff] %v2314_v29  ;;  %v2209_v27 = vpop.f32.mrf.mxu0 }
 0x236   : > { %v2070_v62 = vpop.f32.mrf.mxu3  ;;  %2704 = vmatmul.msk.bf16.gmra.mxu2 %vm724_vm3, %v4288_v55  ;;  %v4008_v55 = vld [vmem:[%s3010_s11 + $0xcc] sm:$0xf] }
 0x237   : > { %v1783_v0 = vpop.f32.mrf.mxu1  ;;  %v2140_v45 = vadd.f32 %v2070_v62, %v1981_v41 }
 0x238   : > { %v1850_v61 = vadd.f32 %v1783_v0, %v4292_v5  ;;  %v4011_v0 = vld [vmem:[%s3010_s11 + $0xd0] sm:$0xf] }
 0x239   : > { %v2279_v16 = vadd.f32 %v2209_v27, %v2140_v45  ;;  %v1914_v56 = vpop.f32.mrf.mxu2  ;;  %v4294_v27 = vld [vmem:[#allocation45_spill] sm:$0xff] }
 0x23a   : > { %v1982_v42 = vadd.f32 %v1914_v56, %v1849_v17  ;;  %v1733_v62 = vrot.slane %v4294_v27, 5  ;;  %v2671_v17 = vrot.slane %v4295_v26, 9  ;;  %v2007_v56 = vshrl.u32 %v4008_v55, 16 }
 0x23b   : > { %v2315_v37 = vadd.f32 %v3932_v32, %v2279_v16  ;;  %2720 = vmatmul.msk.bf16.gmra.mxu3 %vm724_vm3, %v4290_v34  ;;  %v2020_v34 = vshrl.u32 %v4011_v0, 16 }
 0x23c   : > { %v1734_v5 = vsel %vm3343_vm7, %v2671_v17, %v1733_v62 }
 0x23d   : > { %2347 = vst [vmem:[%s3940_s9 + $0x38] sm:$0xff] %v2315_v37  ;;  %v2212_v49 = vpop.f32.mrf.mxu0  ;;  %v2016_v37 = vshll.u32 %v4011_v0, 16 }
 0x23e   : > { %v2073_v39 = vpop.f32.mrf.mxu3 }
 0x23f   : > { %v1786_v53 = vpop.f32.mrf.mxu1  ;;  %v2141_v12 = vadd.f32 %v2073_v39, %v1982_v42 }
 0x240   : > { %2737 = vmatmul.msk.bf16.gmra.mxu0 %vm724_vm3, %v4291_v51  ;;  %v1851_v46 = vadd.f32 %v1786_v53, %v4293_v14  ;;  %v1735_v53 = vrot.slane %v1733_v62, 4 }
 0x241   : > { %v2280_v15 = vadd.f32 %v2212_v49, %v2141_v12  ;;  %v1916_v3 = vpop.f32.mrf.mxu2  ;;  %v1736_v12 = vrot.slane %v3766_v58, 5 }
 0x242   : > { %2685 = vmatmul.msk.bf16.gmra.mxu1 %vm724_vm3, %v4291_v51  ;;  %v1983_v47 = vadd.f32 %v1916_v3, %v1850_v61  ;;  %v2009_v61 = vrot.slane %v2007_v56, 4  ;;  %v2168_v56 = vrot.slane %v4011_v0, 5 }
 0x243   : > { %v2316_v22 = vadd.f32 %v3932_v32, %v2280_v15 }
 0x244   : > { %v2170_v0 = vrot.slane %v2168_v56, 4 }
 0x245   : > { %2348 = vst [vmem:[%s3940_s9 + $0x40] sm:$0xff] %v2316_v22  ;;  %v2214_v1 = vpop.f32.mrf.mxu0  ;;  %v2018_v22 = vrot.slane %v2016_v37, 5 }
 0x246   : > { %v2075_v23 = vpop.f32.mrf.mxu3  ;;  %2705 = vmatmul.msk.bf16.gmra.mxu2 %vm724_vm3, %v3759_v30 }
 0x247   : > { %v1788_v11 = vpop.f32.mrf.mxu1  ;;  %v2142_v57 = vadd.f32 %v2075_v23, %v1983_v47  ;;  %v2022_v47 = vrot.slane %v2020_v34, 4  ;;  %v282_v23 = vld [vmem:[%s3010_s11 + $0xd4] sm:$0x1] }
 0x248   : > { %v1852_v49 = vadd.f32 %v1788_v11, %v3763_v43  ;;  %v1737_v43 = vsel %vm3343_vm7, %v1735_v53, %v1736_v12  ;;  %v2171_v53 = vrot.slane %v282_v23, 5  ;;  %v2763_v12 = vld [vmem:[%s3010_s11 + $0xcc] sm:$0xff] }
 0x249   : > { %v2281_v2 = vadd.f32 %v2214_v1, %v2142_v57  ;;  %v1919_v8 = vpop.f32.mrf.mxu2  ;;  %v1739_v57 = vunpack.c.l.b16 %v1734_v5 }
 0x24a   : > { %v1984_v29 = vadd.f32 %v1919_v8, %v1851_v46  ;;  %v2023_v46 = vor.u32 %v2022_v47, %v2018_v22  ;;  %v2026_v8 = vshll.u32 %v282_v23, 16 }
 0x24b   : > { %v2317_v21 = vadd.f32 %v3932_v32, %v2281_v2  ;;  %2721 = vmatmul.msk.bf16.gmra.mxu3 %vm724_vm3, %v3350_v10  ;;  %v2010_v10 = vshll.u32 %v4008_v55, 16  ;;  %v1740_v2 = vunpack.c.l.b16 %v1737_v43 }
 0x24c   : > { %v2028_v26 = vrot.slane %v2026_v8, 5 }
 0x24d   : > { %2349 = vst [vmem:[%s3940_s9 + $0x48] sm:$0xff] %v2317_v21  ;;  %v2217_v41 = vpop.f32.mrf.mxu0  ;;  %v2012_v3 = vrot.slane %v2010_v10, 5 }
 0x24e   : > { %v2078_v30 = vpop.f32.mrf.mxu3 }
 0x24f   : > { %v1791_v45 = vpop.f32.mrf.mxu1  ;;  %v2143_v16 = vadd.f32 %v2078_v30, %v1984_v29  ;;  %v2013_v14 = vor.u32 %v2012_v3, %v2009_v61  ;;  %v1741_v30 = vpack.c.b16 %v1740_v2, %v1739_v57 }
 0x250   : > { %2738 = vmatmul.msk.bf16.gmra.mxu0 %vm724_vm3, %v3782_v35  ;;  %v1853_v29 = vadd.f32 %v1791_v45, %v3780_v40  ;;  %v2724_v45 = vrot.slane %v4008_v55, 9 }
 0x251   : > { %v2282_v42 = vadd.f32 %v2217_v41, %v2143_v16  ;;  %v1921_v39 = vpop.f32.mrf.mxu2  ;;  %v2024_v16 = vrot.slane %v2023_v46, 4 }
 0x252   : > { %2686 = vmatmul.msk.bf16.gmra.mxu1 %vm724_vm3, %v3782_v35  ;;  %v1985_v15 = vadd.f32 %v1921_v39, %v1852_v49  ;;  %v2169_v38 = vsel %vm3343_vm7, %v2724_v45, %v2168_v56 }
 0x253   : > { %v2318_v51 = vadd.f32 %v3932_v32, %v2282_v42  ;;  %v2174_v43 = vunpack.c.l.b16 %v2169_v38 }
 0x255   : > { %2350 = vst [vmem:[%s3940_s9 + $0x50] sm:$0xff] %v2318_v51  ;;  %v2219_v1 = vpop.f32.mrf.mxu0 }
 0x256   : > { %v2080_v35 = vpop.f32.mrf.mxu3  ;;  %2706 = vmatmul.msk.bf16.gmra.mxu2 %vm724_vm3, %v3791_v9  ;;  %v2014_v9 = vrot.slane %v2013_v14, 4 }
 0x257   : > { %v1793_v58 = vpop.f32.mrf.mxu1  ;;  %v2144_v11 = vadd.f32 %v2080_v35, %v1985_v15 }
 0x258   : > { %v2019_v40 = vsel %vm3040_vm4, %v2014_v9, %v2018_v22  ;;  %v1854_v49 = vadd.f32 %v1793_v58, %v3794_v28  ;;  %v2172_v28 = vsel %vm3343_vm7, %v2170_v0, %v2171_v53 }
 0x259   : > { %v2283_v21 = vadd.f32 %v2219_v1, %v2144_v11  ;;  %v1924_v41 = vpop.f32.mrf.mxu2  ;;  %v2031_v5 = vunpack.c.l.b16 %v2019_v40  ;;  %v2175_v23 = vunpack.c.l.b16 %v2172_v28 }
 0x25a   : > { %v1986_v62 = vadd.f32 %v1924_v41, %v1853_v29 }
 0x25b   : > { %v2319_v27 = vadd.f32 %v3932_v32, %v2283_v21  ;;  %2722 = vmatmul.msk.bf16.gmra.mxu3 %vm724_vm3, %v3798_v24  ;;  %v2029_v24 = vsel %vm3040_vm4, %v2024_v16, %v2028_v26  ;;  %v2176_v2 = vpack.c.b16 %v2175_v23, %v2174_v43 }
 0x25c   : > { %v2032_v61 = vunpack.c.l.b16 %v2029_v24 }
 0x25d   : > { %2351 = vst [vmem:[%s3940_s9 + $0x58] sm:$0xff] %v2319_v27  ;;  %v2222_v17 = vpop.f32.mrf.mxu0 }
 0x25e   : > { %v2083_v10 = vpop.f32.mrf.mxu3  ;;  %v2033_v1 = vpack.c.b16 %v2032_v61, %v2031_v5 }
 0x25f   : > { %v1796_v37 = vpop.f32.mrf.mxu1  ;;  %v2145_v34 = vadd.f32 %v2083_v10, %v1986_v62 }
 0x260   : > { %2739 = vmatmul.msk.bf16.gmra.mxu0 %vm724_vm3, %v1741_v30  ;;  %v1855_v58 = vadd.f32 %v1796_v37, %v3805_v19 }
 0x261   : > { %v2284_v42 = vadd.f32 %v2222_v17, %v2145_v34  ;;  %v1926_v39 = vpop.f32.mrf.mxu2 }
 0x262   : > { %2687 = vmatmul.msk.bf16.gmra.mxu1 %vm724_vm3, %v1741_v30  ;;  %v1987_v15 = vadd.f32 %v1926_v39, %v1854_v49 }
 0x263   : > { %v2320_v51 = vadd.f32 %v3932_v32, %v2284_v42 }
 0x265   : > { %2352 = vst [vmem:[%s3940_s9 + $0x60] sm:$0xff] %v2320_v51  ;;  %v2224_v3 = vpop.f32.mrf.mxu0 }
 0x266   : > { %v2085_v55 = vpop.f32.mrf.mxu3  ;;  %2707 = vmatmul.msk.bf16.gmra.mxu2 %vm724_vm3, %v2763_v12 }
 0x267   : > { %v1798_v22 = vpop.f32.mrf.mxu1  ;;  %v2146_v47 = vadd.f32 %v2085_v55, %v1987_v15 }
 0x268   : > { %v1856_v41 = vadd.f32 %v1798_v22, %v3810_v59 }
 0x269   : > { %v2285_v35 = vadd.f32 %v2224_v3, %v2146_v47  ;;  %v1929_v11 = vpop.f32.mrf.mxu2 }
 0x26a   : > { %v1988_v20 = vadd.f32 %v1929_v11, %v1855_v58 }
 0x26b   : > { %v2321_v57 = vadd.f32 %v3932_v32, %v2285_v35  ;;  %2723 = vmatmul.msk.bf16.gmra.mxu3 %vm724_vm3, %v2033_v1 }
 0x26d   : > { %2353 = vst [vmem:[%s3940_s9 + $0x68] sm:$0xff] %v2321_v57  ;;  %v2227_v14 = vpop.f32.mrf.mxu0 }
 0x26e   : > { %v2088_v46 = vpop.f32.mrf.mxu3 }
 0x26f   : > { %v1801_v8 = vpop.f32.mrf.mxu1  ;;  %v2147_v21 = vadd.f32 %v2088_v46, %v1988_v20 }
 0x270   : > { %2740 = vmatmul.msk.bf16.gmra.mxu0 %vm724_vm3, %v2176_v2  ;;  %v1857_v56 = vadd.f32 %v1801_v8, %v3819_v18 }
 0x271   : > { %v2286_v29 = vadd.f32 %v2227_v14, %v2147_v21  ;;  %v1931_v19 = vpop.f32.mrf.mxu2 }
 0x272   : > { %v1989_v62 = vadd.f32 %v1931_v19, %v1856_v41 }
 0x273   : > { %v2322_v27 = vadd.f32 %v3932_v32, %v2286_v29 }
 0x275   : > { %2354 = vst [vmem:[%s3940_s9 + $0x70] sm:$0xff] %v2322_v27  ;;  %v2229_v30 = vpop.f32.mrf.mxu0 }
 0x276   : > { %v2090_v9 = vpop.f32.mrf.mxu3 }
 0x277   : > { %v1803_v16 = vpop.f32.mrf.mxu1  ;;  %v2148_v26 = vadd.f32 %v2090_v9, %v1989_v62 }
 0x278   : > { %v1858_v49 = vadd.f32 %v1803_v16, %v3824_v13 }
 0x279   : > { %v2287_v17 = vadd.f32 %v2229_v30, %v2148_v26  ;;  %v1934_v10 = vpop.f32.mrf.mxu2 }
 0x27a   : > { %v1990_v34 = vadd.f32 %v1934_v10, %v1857_v56 }
 0x27b   : > { %v2323_v37 = vadd.f32 %v3932_v32, %v2287_v17 }
 0x27d   : > { %2355 = vst [vmem:[%s3940_s9 + $0x78] sm:$0xff] %v2323_v37  ;;  %v2232_v40 = vpop.f32.mrf.mxu0 }
 0x27e   : > { %v2093_v59 = vpop.f32.mrf.mxu3 }
 0x27f   : > { %v1806_v24 = vpop.f32.mrf.mxu1  ;;  %v2149_v45 = vadd.f32 %v2093_v59, %v1990_v34 }
 0x280   : > { %v1859_v61 = vadd.f32 %v1806_v24, %v3833_v52 }
 0x281   : > { %v2288_v42 = vadd.f32 %v2232_v40, %v2149_v45  ;;  %v1936_v39 = vpop.f32.mrf.mxu2 }
 0x282   : > { %v1991_v53 = vadd.f32 %v1936_v39, %v1858_v49 }
 0x283   : > { %v2324_v0 = vadd.f32 %v3932_v32, %v2288_v42 }
 0x285   : > { %2356 = vst [vmem:[%s3940_s9 + $0x80] sm:$0xff] %v2324_v0  ;;  %v2234_v12 = vpop.f32.mrf.mxu0 }
 0x286   : > { %v2095_v18 = vpop.f32.mrf.mxu3 }
 0x287   : > { %v1808_v51 = vpop.f32.mrf.mxu1  ;;  %v2150_v15 = vadd.f32 %v2095_v18, %v1991_v53 }
 0x288   : > { %v1860_v43 = vadd.f32 %v1808_v51, %v3838_v50 }
 0x289   : > { %v2289_v5 = vadd.f32 %v2234_v12, %v2150_v15  ;;  %v1939_v3 = vpop.f32.mrf.mxu2 }
 0x28a   : > { %v1992_v28 = vadd.f32 %v1939_v3, %v1859_v61 }
 0x28b   : > { %v2325_v38 = vadd.f32 %v3932_v32, %v2289_v5 }
 0x28d   : > { %2357 = vst [vmem:[%s3940_s9 + $0x88] sm:$0xff] %v2325_v38  ;;  %v2237_v55 = vpop.f32.mrf.mxu0 }
 0x28e   : > { %v2098_v13 = vpop.f32.mrf.mxu3 }
 0x28f   : > { %v1811_v22 = vpop.f32.mrf.mxu1  ;;  %v2151_v47 = vadd.f32 %v2098_v13, %v1992_v28 }
 0x290   : > { %v1861_v14 = vadd.f32 %v1811_v22, %v3847_v60 }
 0x291   : > { %v2290_v1 = vadd.f32 %v2237_v55, %v2151_v47  ;;  %v1941_v23 = vpop.f32.mrf.mxu2 }
 0x292   : > { %v1993_v58 = vadd.f32 %v1941_v23, %v1860_v43 }
 0x293   : > { %v2326_v35 = vadd.f32 %v3932_v32, %v2290_v1 }
 0x295   : > { %2358 = vst [vmem:[%s3940_s9 + $0x90] sm:$0xff] %v2326_v35  ;;  %v2239_v11 = vpop.f32.mrf.mxu0 }
 0x296   : > { %v2100_v52 = vpop.f32.mrf.mxu3 }
 0x297   : > { %v1813_v57 = vpop.f32.mrf.mxu1  ;;  %v2152_v20 = vadd.f32 %v2100_v52, %v1993_v58 }
 0x298   : > { %v1862_v62 = vadd.f32 %v1813_v57, %v3852_v4 }
 0x299   : > { %v2291_v2 = vadd.f32 %v2239_v11, %v2152_v20  ;;  %v1944_v46 = vpop.f32.mrf.mxu2 }
 0x29a   : > { %v1994_v21 = vadd.f32 %v1944_v46, %v1861_v14 }
 0x29b   : > { %v2327_v8 = vadd.f32 %v3932_v32, %v2291_v2 }
 0x29d   : > { %2359 = vst [vmem:[%s3940_s9 + $0x98] sm:$0xff] %v2327_v8  ;;  %v2242_v29 = vpop.f32.mrf.mxu0 }
 0x29e   : > { %v2103_v50 = vpop.f32.mrf.mxu3 }
 0x29f   : > { %v1816_v41 = vpop.f32.mrf.mxu1  ;;  %v2153_v19 = vadd.f32 %v2103_v50, %v1994_v21 }
 0x2a0   : > { %v1863_v37 = vadd.f32 %v1816_v41, %v3861_v48 }
 0x2a1   : > { %v2292_v27 = vadd.f32 %v2242_v29, %v2153_v19  ;;  %v1946_v30 = vpop.f32.mrf.mxu2 }
 0x2a2   : > { %v1995_v16 = vadd.f32 %v1946_v30, %v1862_v62 }
 0x2a3   : > { %v2328_v9 = vadd.f32 %v3932_v32, %v2292_v27 }
 0x2a5   : > { %2360 = vst [vmem:[%s3940_s9 + $0xa0] sm:$0xff] %v2328_v9  ;;  %v2244_v26 = vpop.f32.mrf.mxu0 }
 0x2a6   : > { %v2105_v60 = vpop.f32.mrf.mxu3 }
 0x2a7   : > { %v1818_v17 = vpop.f32.mrf.mxu1  ;;  %v2154_v56 = vadd.f32 %v2105_v60, %v1995_v16 }
 0x2a8   : > { %v1864_v39 = vadd.f32 %v1818_v17, %v3866_v33 }
 0x2a9   : > { %v2293_v10 = vadd.f32 %v2244_v26, %v2154_v56  ;;  %v1949_v34 = vpop.f32.mrf.mxu2 }
 0x2aa   : > { %v1996_v59 = vadd.f32 %v1949_v34, %v1863_v37 }
 0x2ab   : > { %v2329_v40 = vadd.f32 %v3932_v32, %v2293_v10 }
 0x2ad   : > { %2361 = vst [vmem:[%s3940_s9 + $0xa8] sm:$0xff] %v2329_v40  ;;  %v2247_v24 = vpop.f32.mrf.mxu0 }
 0x2ae   : > { %v2108_v4 = vpop.f32.mrf.mxu3 }
 0x2af   : > { %v1821_v45 = vpop.f32.mrf.mxu1  ;;  %v2155_v42 = vadd.f32 %v2108_v4, %v1996_v59 }
 0x2b0   : > { %v1865_v61 = vadd.f32 %v1821_v45, %v3875_v7 }
 0x2b1   : > { %v2294_v49 = vadd.f32 %v2247_v24, %v2155_v42  ;;  %v1951_v0 = vpop.f32.mrf.mxu2 }
 0x2b2   : > { %v1997_v12 = vadd.f32 %v1951_v0, %v1864_v39 }
 0x2b3   : > { %v2330_v53 = vadd.f32 %v3932_v32, %v2294_v49 }
 0x2b5   : > { %2362 = vst [vmem:[%s3940_s9 + $0xb0] sm:$0xff] %v2330_v53  ;;  %v2249_v18 = vpop.f32.mrf.mxu0 }
 0x2b6   : > { %v2110_v48 = vpop.f32.mrf.mxu3 }
 0x2b7   : > { %v1823_v51 = vpop.f32.mrf.mxu1  ;;  %v2156_v15 = vadd.f32 %v2110_v48, %v1997_v12 }
 0x2b8   : > { %v1866_v1 = vadd.f32 %v1823_v51, %v3880_v36 }
 0x2b9   : > { %v2295_v5 = vadd.f32 %v2249_v18, %v2156_v15  ;;  %v1954_v3 = vpop.f32.mrf.mxu2 }
 0x2ba   : > { %v1998_v28 = vadd.f32 %v1954_v3, %v1865_v61 }
 0x2bb   : > { %v2331_v38 = vadd.f32 %v3932_v32, %v2295_v5 }
 0x2bd   : > { %2363 = vst [vmem:[%s3940_s9 + $0xb8] sm:$0xff] %v2331_v38  ;;  %v2252_v55 = vpop.f32.mrf.mxu0 }
 0x2be   : > { %v2113_v33 = vpop.f32.mrf.mxu3 }
 0x2bf   : > { %v1826_v13 = vpop.f32.mrf.mxu1  ;;  %v2157_v22 = vadd.f32 %v2113_v33, %v1998_v28 }
 0x2c0   : > { %v1867_v20 = vadd.f32 %v1826_v13, %v3889_v6 }
 0x2c1   : > { %v2296_v47 = vadd.f32 %v2252_v55, %v2157_v22  ;;  %v1956_v43 = vpop.f32.mrf.mxu2 }
 0x2c2   : > { %v1999_v35 = vadd.f32 %v1956_v43, %v1866_v1 }
 0x2c3   : > { %v2332_v23 = vadd.f32 %v3932_v32, %v2296_v47 }
 0x2c5   : > { %2364 = vst [vmem:[%s3940_s9 + $0xc0] sm:$0xff] %v2332_v23  ;;  %v2254_v58 = vpop.f32.mrf.mxu0 }
 0x2c6   : > { %v2115_v7 = vpop.f32.mrf.mxu3 }
 0x2c7   : > { %v1828_v11 = vpop.f32.mrf.mxu1  ;;  %v2158_v52 = vadd.f32 %v2115_v7, %v1999_v35 }
 0x2c8   : > { %v1868_v41 = vadd.f32 %v1828_v11, %v3894_v25 }
 0x2c9   : > { %v2297_v57 = vadd.f32 %v2254_v58, %v2158_v52  ;;  %v1959_v2 = vpop.f32.mrf.mxu2 }
 0x2ca   : > { %v2000_v46 = vadd.f32 %v1959_v2, %v1867_v20 }
 0x2cb   : > { %v2333_v14 = vadd.f32 %v3932_v32, %v2297_v57 }
 0x2cd   : > { %2365 = vst [vmem:[%s3940_s9 + $0xc8] sm:$0xff] %v2333_v14  ;;  %v2257_v8 = vpop.f32.mrf.mxu0 }
 0x2ce   : > { %v2118_v36 = vpop.f32.mrf.mxu3 }
 0x2cf   : > { %v2159_v21 = vadd.f32 %v2118_v36, %v2000_v46  ;;  %v1831_v29 = vpop.f32.mrf.mxu1 }
 0x2d0   : > { %v1869_v26 = vadd.f32 %v1831_v29, %v3903_v54 }
 0x2d1   : > { %v2298_v50 = vadd.f32 %v2257_v8, %v2159_v21  ;;  %v1961_v19 = vpop.f32.mrf.mxu2 }
 0x2d2   : > { %v2001_v62 = vadd.f32 %v1961_v19, %v1868_v41 }
 0x2d3   : > { %v2334_v27 = vadd.f32 %v3932_v32, %v2298_v50 }
 0x2d5   : > { %2366 = vst [vmem:[%s3940_s9 + $0xd0] sm:$0xff] %v2334_v27  ;;  %v2259_v30 = vpop.f32.mrf.mxu0 }
 0x2d6   : > { %v2120_v6 = vpop.f32.mrf.mxu3 }
 0x2d7   : > { %v2160_v9 = vadd.f32 %v2120_v6, %v2001_v62  ;;  %v1833_v17 = vpop.f32.mrf.mxu1 }
 0x2d8   : > { %v1870_v59 = vadd.f32 %v1833_v17, %v3908_v31 }
 0x2d9   : > { %v2299_v16 = vadd.f32 %v2259_v30, %v2160_v9  ;;  %v1964_v60 = vpop.f32.mrf.mxu2 }
 0x2da   : > { %v2002_v10 = vadd.f32 %v1964_v60, %v1869_v26 }
 0x2db   : > { %v2335_v56 = vadd.f32 %v3932_v32, %v2299_v16 }
 0x2dd   : > { %2367 = vst [vmem:[%s3940_s9 + $0xd8] sm:$0xff] %v2335_v56  ;;  %v2262_v37 = vpop.f32.mrf.mxu0 }
 0x2de   : > { %v2123_v25 = vpop.f32.mrf.mxu3 }
 0x2df   : > { %v2161_v34 = vadd.f32 %v2123_v25, %v2002_v10  ;;  %v1836_v42 = vpop.f32.mrf.mxu1 }
 0x2e0   : > { %v1871_v53 = vadd.f32 %v1836_v42, %v3917_v44 }
 0x2e1   : > { %v2300_v40 = vadd.f32 %v2262_v37, %v2161_v34  ;;  %v1966_v24 = vpop.f32.mrf.mxu2 }
 0x2e2   : > { %v2003_v45 = vadd.f32 %v1966_v24, %v1870_v59 }
 0x2e3   : > { %v2336_v4 = vadd.f32 %v3932_v32, %v2300_v40 }
 0x2e5   : > { %2368 = vst [vmem:[%s3940_s9 + $0xe0] sm:$0xff] %v2336_v4  ;;  %v2264_v54 = vpop.f32.mrf.mxu0 }
 0x2e6   : > { %v2125_v49 = vpop.f32.mrf.mxu3 }
 0x2e7   : > { %v2162_v39 = vadd.f32 %v2125_v49, %v2003_v45  ;;  %v1838_v31 = vpop.f32.mrf.mxu1 }
 0x2e8   : > { %v1872_v3 = vadd.f32 %v1838_v31, %v3922_v63 }
 0x2e9   : > { %v2301_v0 = vadd.f32 %v2264_v54, %v2162_v39  ;;  %v1969_v12 = vpop.f32.mrf.mxu2 }
 0x2ea   : > { %v2004_v48 = vadd.f32 %v1969_v12, %v1871_v53 }
 0x2eb   : > { %v2337_v18 = vadd.f32 %v3932_v32, %v2301_v0 }
 0x2ed   : > { %2369 = vst [vmem:[%s3940_s9 + $0xe8] sm:$0xff] %v2337_v18  ;;  %v2267_v51 = vpop.f32.mrf.mxu0 }
 0x2ee   : > { %v2128_v15 = vpop.f32.mrf.mxu3 }
 0x2ef   : > { %v2163_v5 = vadd.f32 %v2128_v15, %v2004_v48 }
 0x2f1   : > { %v2302_v61 = vadd.f32 %v2267_v51, %v2163_v5  ;;  %v1971_v38 = vpop.f32.mrf.mxu2 }
 0x2f2   : > { %v2005_v28 = vadd.f32 %v1971_v38, %v1872_v3 }
 0x2f3   : > { %v2338_v44 = vadd.f32 %v3932_v32, %v2302_v61 }
 0x2f5   : > { %2370 = vst [vmem:[%s3940_s9 + $0xf0] sm:$0xff] %v2338_v44  ;;  %v2269_v13 = vpop.f32.mrf.mxu0 }
 0x2f6   : > { %v2130_v55 = vpop.f32.mrf.mxu3 }
 0x2f7   : > { %v2164_v33 = vadd.f32 %v2130_v55, %v2005_v28 }
 0x2f9   : > { %v2303_v22 = vadd.f32 %v2269_v13, %v2164_v33 }
 0x2fb   : > { %v2339_v63 = vadd.f32 %v3932_v32, %v2303_v22 }
 0x2fd   : > { %2371 = vst [vmem:[%s3940_s9 + $0xf8] sm:$0xff] %v2339_v63 }
 0x2fe   : > { %2863 = shalt.err (!%p2860_p5)
}
 0x2ff   : > { %s2916_s5 = smov 128   ;;  %s2917_s7 = smov 8  }
 0x300   : > { %2769 = dma.vmem_to_hbm [thread:$0]  (%p2978_p4), %s2390_s21, 4096, %s2392_s23, %s2373_s15, %s2916_s5, %s2916_s5, %s2917_s7  }
 0x301 PF: > { %p2775_p6 = scmp.ge.s32.totalorder %s2914_s17, 2  ;;  %s2406_s8 = sand.u32 1, %s2894_s12  }
 0x302   : > { %s2407_s9 = scalar_lea.sflag [#allocation3], %s2406_s8 }
 0x303   : > { %p2772_p7 = pnand %p2775_p6, %p2985_p8 }
 0x305   : > { %p2773_p9 = pneg %p2772_p7 }
 0x307   : > { %2889 = dma.done.wait (%p2773_p9), %s2407_s9, 4096  }
 0x308   : > { %2891 = vsyncadd (%p2773_p9), %s2407_s9, 4294963200  ;;  %s16_s17 = sadd.s32 1, %s2914_s17   ;;  %s4296_s12 = smov %s2898_s13 }
 0x309   : > { %p13_p10 = scmp.ge.s32.totalorder %s16_s17, 4   ;;  %s4297_s13 = smov %s2902_s14 }
 0x30a   : > { %s4298_s14 = smov %s2991_s25  ;;  %s4299_s15 = smov %s2910_s16 }
 0x30b   : > { %s4300_s16 = smov %s4302_s20  ;;  %15 = sbr.rel (!%p13_p10) target bundleno = 4 (0x4), region = 74 }
 0x310   :  { %2413 = vsyncpa [#allocation3], 1 }
 0x311   :  { %2415 = vsyncpa [#allocation3 + $0x1], 1 }

</bundles_post_ra>
